<compile_context>
chip_gen: v7x
topology: tpu7x:2x2x1
jax: 0.10.0
libtpu: 0.0.40
codegen_flags: <defaults>
</compile_context>

<pallas_src>
import math
import functools

import jax
import jax.numpy as jnp
from jax.experimental import pallas as pl
from jax.experimental.pallas import tpu as pltpu


def _round_up(x, m):
    return -(-x // m) * m


def _choose_chunk(s_pad):
    """Time-chunk length: multiple of 8, divides s_pad, keeps #chunks bounded."""
    target = max(8, _round_up(max(s_pad // 32, 1), 8))
    c = target
    while s_pad % c != 0:
        c += 8
    return min(c, s_pad)


# --------------------------------------------------------------------------------------
# Pallas kernel: one block of B_blk batch elements per grid step.
# --------------------------------------------------------------------------------------
def _s4d_wrapper_kernel(x_ref,                 # (B, S, Dp) f32
                        len_ref,               # (B, 1, 1) int32 valid lengths
                        kf_ref, kb_ref,        # (S, Dp) f32   conv kernels (D-skip folded in row 0)
                        wf_ref, wb_ref,        # (Dp, 2Dp) bf16 GLU weight, pre-split (fwd / bwd rows)
                        bglu_ref,              # (1, 2Dp) f32  GLU bias
                        gamma_ref, beta_ref,   # (1, Dp) f32   LayerNorm affine (zero in padded lanes)
                        out_ref,               # (B, S, Dp) f32
                        zp_ref,                # (B, S + 2*LC, Dp) f32 zero-framed staging scratch
                        *, prenorm: bool, d_true: int, chunk: int, lag_groups: int):
    B, S, Dp = x_ref.shape
    LC = chunk
    n_chunks = S // LC
    inv_d = 1.0 / float(d_true)

    gamma = gamma_ref[...]
    beta = beta_ref[...]

    def layer_norm(v):
        # sums divided by the true (unpadded) D; padded lanes are zero by construction.
        mu = jnp.sum(v, axis=-1, keepdims=True) * inv_d
        var = jnp.sum(v * v, axis=-1, keepdims=True) * inv_d - mu * mu
        return (v - mu) * jax.lax.rsqrt(var + 1e-5) * gamma + beta

    c0 = 0.7978845608028654  # sqrt(2/pi)

    def gelu(v):
        return 0.5 * v * (1.0 + jnp.tanh(c0 * (v + 0.044715 * v * v * v)))

    # ---- stage 1: (pre)norm + length mask, staged into the zero-framed scratch ----
    x = x_ref[...]
    state = layer_norm(x) if prenorm else x
    t_iota = jax.lax.broadcasted_iota(jnp.int32, (B, S, 1), 1)
    lmask = (t_iota < len_ref[...]).astype(jnp.float32)            # (B, S, 1)
    z = state * lmask                                              # masked SSM input

    zero_band = jnp.zeros((B, LC, Dp), jnp.float32)
    zp_ref[:, 0:LC, :] = zero_band                                 # tiny (LC rows) zero frames,
    zp_ref[:, LC:LC + S, :] = z                                    # rewritten every step so the
    zp_ref[:, LC + S:LC + 2 * S if False else LC + S + LC, :] = zero_band  # kernel is core-assignment safe

    def conv_chunk(k_ref, t0, n_groups, sign):
        # Depthwise conv for one (B, LC, Dp) output chunk.
        #   sign = -1: causal  y[t] = sum_l K[l] z[t-l]
        #   sign = +1: anti-causal (== reverse -> causal conv -> reverse on valid rows)
        def group(g, acc):
            l0 = pl.multiple_of(g * 8, 8)
            krows = k_ref[pl.ds(l0, 8), :]                         # aligned (8, Dp) kernel load
            for j in range(8):                                     # static 8-lag unroll per RMW
                zs = zp_ref[:, pl.ds(LC + t0 + sign * (l0 + j), LC), :]   # (B, LC, Dp)
                acc = acc + krows[j:j + 1, :][None] * zs
            return acc
        acc0 = jnp.zeros((B, LC, Dp), jnp.float32)
        return jax.lax.fori_loop(0, n_groups, group, acc0)

    # ---- stage 2: per-time-chunk conv + GELU + GLU + residual (+ postnorm) ----
    for ci in range(n_chunks):                                     # static, bounded by _choose_chunk
        t0 = ci * LC
        ngf = min((t0 + LC) // 8, lag_groups)                      # triangular bound, causal
        ngb = min((S - t0) // 8, lag_groups)                       # triangular bound, anti-causal

        acc_f = conv_chunk(kf_ref, t0, ngf, -1)
        acc_b = conv_chunk(kb_ref, t0, ngb, +1)

        yf = gelu(acc_f).reshape(B * LC, Dp).astype(jnp.bfloat16)
        yb = gelu(acc_b).reshape(B * LC, Dp).astype(jnp.bfloat16)

        # split GLU matmul (no concat copy); bf16 MXU, f32 accumulation.
        u = (jnp.dot(yf, wf_ref[...], preferred_element_type=jnp.float32)
             + jnp.dot(yb, wb_ref[...], preferred_element_type=jnp.float32)
             + bglu_ref[...])                                      # (B*LC, 2Dp)
        glu = u[:, :Dp] * jax.nn.sigmoid(u[:, Dp:])                # (B*LC, Dp)

        res = x_ref[:, t0:t0 + LC, :].reshape(B * LC, Dp)
        outc = glu + res
        if not prenorm:
            outc = layer_norm(outc)
        out_ref[:, t0:t0 + LC, :] = outc.reshape(B, LC, Dp)


# --------------------------------------------------------------------------------------
# Wrapper: padding, parameter prep (fold/split/pad/cast), VMEM-budgeted batch blocking.
# --------------------------------------------------------------------------------------
def s4d_wrapper_forward(x, input_mask, params, *, prenorm=True, block_batch=None,
                        max_lag=None):
    N, S, D = x.shape
    x = x.astype(jnp.float32)

    S_pad = _round_up(max(S, 8), 8)          # keep reshapes layout-preserving views
    Dp = _round_up(max(D, 128), 128)         # lane-dense last dim (no vst.msk partial stores)
    H2p = 2 * Dp
    LC = _choose_chunk(S_pad)
    lag_groups = (S_pad // 8 if max_lag is None
                  else max(1, min(S_pad, _round_up(int(max_lag), 8)) // 8))

    # Valid lengths from the {0,1} right-padded mask (computed once, outside the kernel).
    mask2 = input_mask.reshape(N, S).astype(jnp.float32)
    lengths = jnp.sum(mask2, axis=1).astype(jnp.int32)              # (N,)

    # --- batch-block size from an explicit VMEM budget (sized for v7x's 64 MiB) ---
    slab = S_pad * Dp * 4
    fixed = 4 * S_pad * Dp * 4 + 8 * Dp * H2p          # K fwd+bwd (f32, dbl-buf) + W (bf16, dbl-buf)
    per_b = 10 * slab                                   # 2x in + 2x out (dbl-buf) + zp + live temporaries
    if block_batch is None:
        budget = 40 * 1024 * 1024
        b = (budget - fixed) // per_b
        b = min(b, (512 * 1024) // (LC * Dp * 4))       # cap per-chunk accumulator footprint
        b = min(b, N)
        if N >= 2:
            b = min(b, (N + 1) // 2)                    # >= 2 grid steps for v7x's 2 TensorCores
        block_batch = max(1, b)
    B_blk = int(block_batch)
    N_pad = _round_up(N, B_blk)

    # --- pad activations and lengths ---
    xp = jnp.zeros((N_pad, S_pad, Dp), jnp.float32).at[:N, :S, :D].set(x)
    lens = jnp.zeros((N_pad, 1, 1), jnp.int32).at[:N, 0, 0].set(lengths)

    # --- parameters: fold D-skip into lag 0, split fwd/bwd halves, zero-pad, pre-cast W ---
    K = params['K'].astype(jnp.float32)                 # (S, 2D), columns [fwd | bwd]
    Dsk = params['D'].astype(jnp.float32).reshape(2 * D)
    kf = K[:, :D].at[0, :].add(Dsk[:D])
    kb = K[:, D:].at[0, :].add(Dsk[D:])
    kfp = jnp.zeros((S_pad, Dp), jnp.float32).at[:S, :D].set(kf)
    kbp = jnp.zeros((S_pad, Dp), jnp.float32).at[:S, :D].set(kb)

    W = params['W_glu'].astype(jnp.float32)             # (2D, 2D), stored (in, out)
    bg = params['b_glu'].astype(jnp.float32).reshape(2 * D)

    def pad_w(wblk):                                    # (D, 2D) -> (Dp, 2Dp), bf16
        wp = jnp.zeros((Dp, H2p), jnp.float32)
        wp = wp.at[:D, :D].set(wblk[:, :D])
        wp = wp.at[:D, Dp:Dp + D].set(wblk[:, D:])
        return wp.astype(jnp.bfloat16)

    wfp = pad_w(W[:D, :])
    wbp = pad_w(W[D:, :])
    bgp = (jnp.zeros((1, H2p), jnp.float32)
           .at[0, :D].set(bg[:D]).at[0, Dp:Dp + D].set(bg[D:]))
    gam = jnp.zeros((1, Dp), jnp.float32).at[0, :D].set(params['ln_gamma'].astype(jnp.float32))
    bet = jnp.zeros((1, Dp), jnp.float32).at[0, :D].set(params['ln_beta'].astype(jnp.float32))

    kernel = functools.partial(_s4d_wrapper_kernel, prenorm=prenorm, d_true=D,
                               chunk=LC, lag_groups=lag_groups)

    # TODO(synk): for very large S*D the resident K/W footprint itself may need bf16 K
    #             and single-buffering before this fits v7x's 64 MiB.
    vmem_limit = int(min(max(fixed + per_b * B_blk + (4 << 20), 32 << 20), 96 << 20))

    grid_spec = pltpu.PrefetchScalarGridSpec(
        num_scalar_prefetch=0,
        grid=(N_pad // B_blk,),
        in_specs=[
            pl.BlockSpec((B_blk, S_pad, Dp), lambda n: (n, 0, 0)),   # x
            pl.BlockSpec((B_blk, 1, 1), lambda n: (n, 0, 0)),        # lengths (int32)
            pl.BlockSpec((S_pad, Dp), lambda n: (0, 0)),             # K forward
            pl.BlockSpec((S_pad, Dp), lambda n: (0, 0)),             # K backward
            pl.BlockSpec((Dp, H2p), lambda n: (0, 0)),               # W_glu fwd rows (bf16)
            pl.BlockSpec((Dp, H2p), lambda n: (0, 0)),               # W_glu bwd rows (bf16)
            pl.BlockSpec((1, H2p), lambda n: (0, 0)),                # GLU bias
            pl.BlockSpec((1, Dp), lambda n: (0, 0)),                 # LN gamma
            pl.BlockSpec((1, Dp), lambda n: (0, 0)),                 # LN beta
        ],
        out_specs=pl.BlockSpec((B_blk, S_pad, Dp), lambda n: (n, 0, 0)),
        scratch_shapes=[pltpu.VMEM((B_blk, S_pad + 2 * LC, Dp), jnp.float32)],
    )

    out = pl.pallas_call(
        kernel,
        out_shape=jax.ShapeDtypeStruct((N_pad, S_pad, Dp), jnp.float32),
        grid_spec=grid_spec,
        compiler_params=pltpu.CompilerParams(
            dimension_semantics=("parallel",),
            vmem_limit_bytes=vmem_limit),
    )(xp, lens, kfp, kbp, wfp, wbp, bgp, gam, bet)

    seq = out[:N, :S, :D]
    return {'sequence': seq, 'global_state': None,
            'input_mask': input_mask.reshape(N, S, 1).astype(jnp.float32),
            'aux_loss': None}


# --------------------------------------------------------------------------------------
# Deterministic parameter init (S4D 'diag-inv', bilinear discretization) + kernel K.
# Complex arithmetic is carried out with explicit real/imag pairs.
# --------------------------------------------------------------------------------------
def init_params(key, hidden_dim, seq_len, d_state=64, dt_min=1e-3, dt_max=1e-1):
    H = 2 * hidden_dim           # S4Block d_model = 2 * hidden_dim
    Nh = d_state // 2            # number of complex diagonal modes per channel
    k1, k2, k3, k4, k5, k6 = jax.random.split(key, 6)

    log_dt = (jax.random.uniform(k1, (H,)) *
              (math.log(dt_max) - math.log(dt_min)) + math.log(dt_min))
    n = jnp.arange(Nh, dtype=jnp.float32)
    A_imag = jnp.broadcast_to((Nh / math.pi) * (Nh / (2.0 * n + 1.0) - 1.0), (H, Nh))
    C_re = jax.random.normal(k2, (H, Nh)) * (0.5 ** 0.5)
    C_im = jax.random.normal(k3, (H, Nh)) * (0.5 ** 0.5)
    D_skip = jax.random.normal(k4, (H,))

    # Bilinear discretization of the diagonal SSM (B == 1).
    dt = jnp.exp(log_dt)[:, None]                     # (H, 1)
    A_re = -0.5 * jnp.ones((H, Nh), jnp.float32)
    A_im = A_imag
    dtA_re = A_re * dt
    dtA_im = A_im * dt
    d_re = 1.0 - 0.5 * dtA_re
    d_im = -0.5 * dtA_im
    dmag2 = d_re * d_re + d_im * d_im
    n_re = 1.0 + 0.5 * dtA_re
    n_im = 0.5 * dtA_im
    dA_re = (n_re * d_re + n_im * d_im) / dmag2
    dA_im = (n_im * d_re - n_re * d_im) / dmag2
    Cd_re = dt * (C_re * d_re + C_im * d_im) / dmag2
    Cd_im = dt * (C_im * d_re - C_re * d_im) / dmag2

    # Vandermonde: K[h, l] = 2 * Re( sum_n Cd[h, n] * dA[h, n]^l )
    r = jnp.sqrt(dA_re ** 2 + dA_im ** 2)
    th = jnp.arctan2(dA_im, dA_re)
    l = jnp.arange(seq_len, dtype=jnp.float32)
    rl = r[:, :, None] ** l[None, None, :]            # (H, Nh, S)
    ang = th[:, :, None] * l[None, None, :]
    p_re = rl * jnp.cos(ang)
    p_im = rl * jnp.sin(ang)
    K = 2.0 * (jnp.einsum('hn,hnl->hl', Cd_re, p_re) -
               jnp.einsum('hn,hnl->hl', Cd_im, p_im))  # (H, S)
    K_ls = jnp.transpose(K).astype(jnp.float32)        # (S, H)

    # GLU head: nn.Linear(2*hidden, 2*hidden) (stored as (in, out)).
    bound = 1.0 / math.sqrt(H)
    W_glu = jax.random.uniform(k5, (H, H), minval=-bound, maxval=bound)
    b_glu = jax.random.uniform(k6, (H,), minval=-bound, maxval=bound)

    return {
        'K': K_ls,
        'D': D_skip.astype(jnp.float32),
        'W_glu': W_glu.astype(jnp.float32),
        'b_glu': b_glu.astype(jnp.float32),
        'ln_gamma': jnp.ones((hidden_dim,), jnp.float32),
        'ln_beta': jnp.zeros((hidden_dim,), jnp.float32),
    }


if __name__ == "__main__":
    N, S, D = 2, 16, 32           # batch, seq, hidden_size
    key = jax.random.PRNGKey(0)
    kx, kp = jax.random.split(key)

    x = jax.random.normal(kx, (N, S, D), dtype=jnp.float32)
    lengths = jnp.array([S, S - 6], dtype=jnp.int32)                    # right-padded
    input_mask = (jnp.arange(S)[None, :] < lengths[:, None]).astype(jnp.float32)  # (N, S)
    x = x * input_mask[:, :, None]                                      # zero padding tokens

    params = init_params(kp, D, S)

    out = s4d_wrapper_forward(x, input_mask, params, prenorm=True)
    seq = jax.block_until_ready(out['sequence'])

    assert seq.shape == (N, S, D)
    assert out['input_mask'].shape == (N, S, 1)
    assert bool(jnp.all(jnp.isfinite(seq)))
    print("KERNEL_OK")
</pallas_src>

<mosaic_0001>
module attributes {stable_mosaic.version = 11 : i64} {
  func.func @_s4d_wrapper_kernel(%arg0: i32, %arg1: memref<1x16x128xf32, #tpu.memory_space<vmem>>, %arg2: memref<1x1x1xi32, #tpu.memory_space<vmem>>, %arg3: memref<16x128xf32, #tpu.memory_space<vmem>>, %arg4: memref<16x128xf32, #tpu.memory_space<vmem>>, %arg5: memref<128x256xbf16, #tpu.memory_space<vmem>>, %arg6: memref<128x256xbf16, #tpu.memory_space<vmem>>, %arg7: memref<1x256xf32, #tpu.memory_space<vmem>>, %arg8: memref<1x128xf32, #tpu.memory_space<vmem>>, %arg9: memref<1x128xf32, #tpu.memory_space<vmem>>, %arg10: memref<1x16x128xf32, #tpu.memory_space<vmem>>, %arg11: memref<1x32x128xf32, #tpu.memory_space<vmem>>) attributes {dimension_semantics = [#tpu.dimension_semantics<parallel>], iteration_bounds = array<i64: 2>, scalar_prefetch = 0 : i64, scratch_operands = 1 : i64, tpu.core_type = #tpu.core_type<tc>, window_params = [{transform_indices = @transform_0, window_bounds = array<i64: 1, 16, 128>}, {transform_indices = @transform_1, window_bounds = array<i64: 1, 1, 1>}, {pipeline_mode = #tpu.pipeline_mode<synchronous>, transform_indices = @transform_2, window_bounds = array<i64: 16, 128>}, {pipeline_mode = #tpu.pipeline_mode<synchronous>, transform_indices = @transform_3, window_bounds = array<i64: 16, 128>}, {pipeline_mode = #tpu.pipeline_mode<synchronous>, transform_indices = @transform_4, window_bounds = array<i64: 128, 256>}, {pipeline_mode = #tpu.pipeline_mode<synchronous>, transform_indices = @transform_5, window_bounds = array<i64: 128, 256>}, {pipeline_mode = #tpu.pipeline_mode<synchronous>, transform_indices = @transform_6, window_bounds = array<i64: 1, 256>}, {pipeline_mode = #tpu.pipeline_mode<synchronous>, transform_indices = @transform_7, window_bounds = array<i64: 1, 128>}, {pipeline_mode = #tpu.pipeline_mode<synchronous>, transform_indices = @transform_8, window_bounds = array<i64: 1, 128>}, {transform_indices = @transform_9, window_bounds = array<i64: 1, 16, 128>}]} {
    %c0 = arith.constant 0 : index
    %c0_0 = arith.constant 0 : index
    %0 = vector.load %arg8[%c0, %c0_0] : memref<1x128xf32, #tpu.memory_space<vmem>>, vector<1x128xf32>
    %c0_1 = arith.constant 0 : index
    %c0_2 = arith.constant 0 : index
    %1 = vector.load %arg9[%c0_1, %c0_2] : memref<1x128xf32, #tpu.memory_space<vmem>>, vector<1x128xf32>
    %c0_3 = arith.constant 0 : index
    %c0_4 = arith.constant 0 : index
    %c0_5 = arith.constant 0 : index
    %2 = vector.load %arg1[%c0_3, %c0_4, %c0_5] : memref<1x16x128xf32, #tpu.memory_space<vmem>>, vector<1x16x128xf32>
    %cst = arith.constant dense<0.000000e+00> : vector<1x16xf32>
    %3 = vector.multi_reduction <add>, %2, %cst [2] : vector<1x16x128xf32> to vector<1x16xf32>
    %4 = vector.shape_cast %3 : vector<1x16xf32> to vector<1x16x1xf32>
    %cst_6 = arith.constant 3.125000e-02 : f32
    %5 = vector.broadcast %cst_6 : f32 to vector<1x16x1xf32>
    %6 = arith.mulf %4, %5 : vector<1x16x1xf32>
    %7 = arith.mulf %2, %2 : vector<1x16x128xf32>
    %cst_7 = arith.constant dense<0.000000e+00> : vector<1x16xf32>
    %8 = vector.multi_reduction <add>, %7, %cst_7 [2] : vector<1x16x128xf32> to vector<1x16xf32>
    %9 = vector.shape_cast %8 : vector<1x16xf32> to vector<1x16x1xf32>
    %cst_8 = arith.constant 3.125000e-02 : f32
    %10 = vector.broadcast %cst_8 : f32 to vector<1x16x1xf32>
    %11 = arith.mulf %9, %10 : vector<1x16x1xf32>
    %12 = arith.mulf %6, %6 : vector<1x16x1xf32>
    %13 = arith.subf %11, %12 : vector<1x16x1xf32>
    %14 = vector.broadcast %6 : vector<1x16x1xf32> to vector<1x16x128xf32>
    %15 = arith.subf %2, %14 : vector<1x16x128xf32>
    %cst_9 = arith.constant 9.99999974E-6 : f32
    %16 = vector.broadcast %cst_9 : f32 to vector<1x16x1xf32>
    %17 = arith.addf %13, %16 : vector<1x16x1xf32>
    %18 = math.rsqrt %17 : vector<1x16x1xf32>
    %19 = vector.broadcast %18 : vector<1x16x1xf32> to vector<1x16x128xf32>
    %20 = arith.mulf %15, %19 : vector<1x16x128xf32>
    %21 = vector.shape_cast %0 : vector<1x128xf32> to vector<1x1x128xf32>
    %22 = vector.broadcast %21 : vector<1x1x128xf32> to vector<1x16x128xf32>
    %23 = arith.mulf %20, %22 : vector<1x16x128xf32>
    %24 = vector.shape_cast %1 : vector<1x128xf32> to vector<1x1x128xf32>
    %25 = vector.broadcast %24 : vector<1x1x128xf32> to vector<1x16x128xf32>
    %26 = arith.addf %23, %25 : vector<1x16x128xf32>
    %27 = tpu.iota {dimensions = array<i32: 1>} : vector<1x16x1xi32>
    %c0_10 = arith.constant 0 : index
    %c0_11 = arith.constant 0 : index
    %c0_12 = arith.constant 0 : index
    %28 = vector.load %arg2[%c0_10, %c0_11, %c0_12] : memref<1x1x1xi32, #tpu.memory_space<vmem>>, vector<1x1x1xi32>
    %29 = vector.broadcast %28 : vector<1x1x1xi32> to vector<1x16x1xi32>
    %30 = arith.cmpi slt, %27, %29 : vector<1x16x1xi32>
    %31 = arith.extui %30 : vector<1x16x1xi1> to vector<1x16x1xi32>
    %32 = arith.sitofp %31 : vector<1x16x1xi32> to vector<1x16x1xf32>
    %33 = vector.broadcast %32 : vector<1x16x1xf32> to vector<1x16x128xf32>
    %34 = arith.mulf %26, %33 : vector<1x16x128xf32>
    %cst_13 = arith.constant 0.000000e+00 : f32
    %35 = vector.broadcast %cst_13 : f32 to vector<1x8x128xf32>
    %c0_14 = arith.constant 0 : index
    %c0_15 = arith.constant 0 : index
    %c0_16 = arith.constant 0 : index
    %36 = vector.load %arg11[%c0_14, %c0_15, %c0_16] : memref<1x32x128xf32, #tpu.memory_space<vmem>>, vector<1x8x128xf32>
    tpu.vector_store %arg11[%c0_14, %c0_15, %c0_16], %35 {strides = array<i32>} : memref<1x32x128xf32, #tpu.memory_space<vmem>>, vector<1x8x128xf32>,
    %c0_17 = arith.constant 0 : index
    %c8 = arith.constant 8 : index
    %c0_18 = arith.constant 0 : index
    %37 = vector.load %arg11[%c0_17, %c8, %c0_18] : memref<1x32x128xf32, #tpu.memory_space<vmem>>, vector<1x16x128xf32>
    tpu.vector_store %arg11[%c0_17, %c8, %c0_18], %34 {strides = array<i32>} : memref<1x32x128xf32, #tpu.memory_space<vmem>>, vector<1x16x128xf32>,
    %c0_19 = arith.constant 0 : index
    %c24 = arith.constant 24 : index
    %c0_20 = arith.constant 0 : index
    %38 = vector.load %arg11[%c0_19, %c24, %c0_20] : memref<1x32x128xf32, #tpu.memory_space<vmem>>, vector<1x8x128xf32>
    tpu.vector_store %arg11[%c0_19, %c24, %c0_20], %35 {strides = array<i32>} : memref<1x32x128xf32, #tpu.memory_space<vmem>>, vector<1x8x128xf32>,
    %cst_21 = arith.constant 0.000000e+00 : f32
    %39 = vector.broadcast %cst_21 : f32 to vector<1x8x128xf32>
    %c0_i32 = arith.constant 0 : i32
    %c8_i32 = arith.constant 8 : i32
    %40 = arith.muli %c0_i32, %c8_i32 : i32
    %41 = tpu.assume_multiple %40, 8 : i32
    %42 = arith.index_cast %41 : i32 to index
    %c0_22 = arith.constant 0 : index
    %43 = vector.load %arg3[%42, %c0_22] : memref<16x128xf32, #tpu.memory_space<vmem>>, vector<8x128xf32>
    %c0_i32_23 = arith.constant 0 : i32
    %44 = arith.addi %41, %c0_i32_23 : i32
    %c-1_i32 = arith.constant -1 : i32
    %45 = arith.muli %c-1_i32, %44 : i32
    %c8_i32_24 = arith.constant 8 : i32
    %46 = arith.addi %c8_i32_24, %45 : i32
    %c0_25 = arith.constant 0 : index
    %47 = arith.index_cast %46 : i32 to index
    %c0_26 = arith.constant 0 : index
    %48 = vector.load %arg11[%c0_25, %47, %c0_26] : memref<1x32x128xf32, #tpu.memory_space<vmem>>, vector<1x8x128xf32>
    %49 = vector.extract_strided_slice %43 {offsets = [0, 0], sizes = [1, 128], strides = [1, 1]} : vector<8x128xf32> to vector<1x128xf32>
    %50 = vector.shape_cast %49 : vector<1x128xf32> to vector<1x1x128xf32>
    %51 = vector.broadcast %50 : vector<1x1x128xf32> to vector<1x8x128xf32>
    %52 = arith.mulf %51, %48 : vector<1x8x128xf32>
    %53 = arith.addf %39, %52 : vector<1x8x128xf32>
    %c1_i32 = arith.constant 1 : i32
    %54 = arith.addi %41, %c1_i32 : i32
    %c-1_i32_27 = arith.constant -1 : i32
    %55 = arith.muli %c-1_i32_27, %54 : i32
    %c8_i32_28 = arith.constant 8 : i32
    %56 = arith.addi %c8_i32_28, %55 : i32
    %c0_29 = arith.constant 0 : index
    %57 = arith.index_cast %56 : i32 to index
    %c0_30 = arith.constant 0 : index
    %58 = vector.load %arg11[%c0_29, %57, %c0_30] : memref<1x32x128xf32, #tpu.memory_space<vmem>>, vector<1x8x128xf32>
    %59 = vector.extract_strided_slice %43 {offsets = [1, 0], sizes = [1, 128], strides = [1, 1]} : vector<8x128xf32> to vector<1x128xf32>
    %60 = vector.shape_cast %59 : vector<1x128xf32> to vector<1x1x128xf32>
    %61 = vector.broadcast %60 : vector<1x1x128xf32> to vector<1x8x128xf32>
    %62 = arith.mulf %61, %58 : vector<1x8x128xf32>
    %63 = arith.addf %53, %62 : vector<1x8x128xf32>
    %c2_i32 = arith.constant 2 : i32
    %64 = arith.addi %41, %c2_i32 : i32
    %c-1_i32_31 = arith.constant -1 : i32
    %65 = arith.muli %c-1_i32_31, %64 : i32
    %c8_i32_32 = arith.constant 8 : i32
    %66 = arith.addi %c8_i32_32, %65 : i32
    %c0_33 = arith.constant 0 : index
    %67 = arith.index_cast %66 : i32 to index
    %c0_34 = arith.constant 0 : index
    %68 = vector.load %arg11[%c0_33, %67, %c0_34] : memref<1x32x128xf32, #tpu.memory_space<vmem>>, vector<1x8x128xf32>
    %69 = vector.extract_strided_slice %43 {offsets = [2, 0], sizes = [1, 128], strides = [1, 1]} : vector<8x128xf32> to vector<1x128xf32>
    %70 = vector.shape_cast %69 : vector<1x128xf32> to vector<1x1x128xf32>
    %71 = vector.broadcast %70 : vector<1x1x128xf32> to vector<1x8x128xf32>
    %72 = arith.mulf %71, %68 : vector<1x8x128xf32>
    %73 = arith.addf %63, %72 : vector<1x8x128xf32>
    %c3_i32 = arith.constant 3 : i32
    %74 = arith.addi %41, %c3_i32 : i32
    %c-1_i32_35 = arith.constant -1 : i32
    %75 = arith.muli %c-1_i32_35, %74 : i32
    %c8_i32_36 = arith.constant 8 : i32
    %76 = arith.addi %c8_i32_36, %75 : i32
    %c0_37 = arith.constant 0 : index
    %77 = arith.index_cast %76 : i32 to index
    %c0_38 = arith.constant 0 : index
    %78 = vector.load %arg11[%c0_37, %77, %c0_38] : memref<1x32x128xf32, #tpu.memory_space<vmem>>, vector<1x8x128xf32>
    %79 = vector.extract_strided_slice %43 {offsets = [3, 0], sizes = [1, 128], strides = [1, 1]} : vector<8x128xf32> to vector<1x128xf32>
    %80 = vector.shape_cast %79 : vector<1x128xf32> to vector<1x1x128xf32>
    %81 = vector.broadcast %80 : vector<1x1x128xf32> to vector<1x8x128xf32>
    %82 = arith.mulf %81, %78 : vector<1x8x128xf32>
    %83 = arith.addf %73, %82 : vector<1x8x128xf32>
    %c4_i32 = arith.constant 4 : i32
    %84 = arith.addi %41, %c4_i32 : i32
    %c-1_i32_39 = arith.constant -1 : i32
    %85 = arith.muli %c-1_i32_39, %84 : i32
    %c8_i32_40 = arith.constant 8 : i32
    %86 = arith.addi %c8_i32_40, %85 : i32
    %c0_41 = arith.constant 0 : index
    %87 = arith.index_cast %86 : i32 to index
    %c0_42 = arith.constant 0 : index
    %88 = vector.load %arg11[%c0_41, %87, %c0_42] : memref<1x32x128xf32, #tpu.memory_space<vmem>>, vector<1x8x128xf32>
    %89 = vector.extract_strided_slice %43 {offsets = [4, 0], sizes = [1, 128], strides = [1, 1]} : vector<8x128xf32> to vector<1x128xf32>
    %90 = vector.shape_cast %89 : vector<1x128xf32> to vector<1x1x128xf32>
    %91 = vector.broadcast %90 : vector<1x1x128xf32> to vector<1x8x128xf32>
    %92 = arith.mulf %91, %88 : vector<1x8x128xf32>
    %93 = arith.addf %83, %92 : vector<1x8x128xf32>
    %c5_i32 = arith.constant 5 : i32
    %94 = arith.addi %41, %c5_i32 : i32
    %c-1_i32_43 = arith.constant -1 : i32
    %95 = arith.muli %c-1_i32_43, %94 : i32
    %c8_i32_44 = arith.constant 8 : i32
    %96 = arith.addi %c8_i32_44, %95 : i32
    %c0_45 = arith.constant 0 : index
    %97 = arith.index_cast %96 : i32 to index
    %c0_46 = arith.constant 0 : index
    %98 = vector.load %arg11[%c0_45, %97, %c0_46] : memref<1x32x128xf32, #tpu.memory_space<vmem>>, vector<1x8x128xf32>
    %99 = vector.extract_strided_slice %43 {offsets = [5, 0], sizes = [1, 128], strides = [1, 1]} : vector<8x128xf32> to vector<1x128xf32>
    %100 = vector.shape_cast %99 : vector<1x128xf32> to vector<1x1x128xf32>
    %101 = vector.broadcast %100 : vector<1x1x128xf32> to vector<1x8x128xf32>
    %102 = arith.mulf %101, %98 : vector<1x8x128xf32>
    %103 = arith.addf %93, %102 : vector<1x8x128xf32>
    %c6_i32 = arith.constant 6 : i32
    %104 = arith.addi %41, %c6_i32 : i32
    %c-1_i32_47 = arith.constant -1 : i32
    %105 = arith.muli %c-1_i32_47, %104 : i32
    %c8_i32_48 = arith.constant 8 : i32
    %106 = arith.addi %c8_i32_48, %105 : i32
    %c0_49 = arith.constant 0 : index
    %107 = arith.index_cast %106 : i32 to index
    %c0_50 = arith.constant 0 : index
    %108 = vector.load %arg11[%c0_49, %107, %c0_50] : memref<1x32x128xf32, #tpu.memory_space<vmem>>, vector<1x8x128xf32>
    %109 = vector.extract_strided_slice %43 {offsets = [6, 0], sizes = [1, 128], strides = [1, 1]} : vector<8x128xf32> to vector<1x128xf32>
    %110 = vector.shape_cast %109 : vector<1x128xf32> to vector<1x1x128xf32>
    %111 = vector.broadcast %110 : vector<1x1x128xf32> to vector<1x8x128xf32>
    %112 = arith.mulf %111, %108 : vector<1x8x128xf32>
    %113 = arith.addf %103, %112 : vector<1x8x128xf32>
    %c7_i32 = arith.constant 7 : i32
    %114 = arith.addi %41, %c7_i32 : i32
    %c-1_i32_51 = arith.constant -1 : i32
    %115 = arith.muli %c-1_i32_51, %114 : i32
    %c8_i32_52 = arith.constant 8 : i32
    %116 = arith.addi %c8_i32_52, %115 : i32
    %c0_53 = arith.constant 0 : index
    %117 = arith.index_cast %116 : i32 to index
    %c0_54 = arith.constant 0 : index
    %118 = vector.load %arg11[%c0_53, %117, %c0_54] : memref<1x32x128xf32, #tpu.memory_space<vmem>>, vector<1x8x128xf32>
    %119 = vector.extract_strided_slice %43 {offsets = [7, 0], sizes = [1, 128], strides = [1, 1]} : vector<8x128xf32> to vector<1x128xf32>
    %120 = vector.shape_cast %119 : vector<1x128xf32> to vector<1x1x128xf32>
    %121 = vector.broadcast %120 : vector<1x1x128xf32> to vector<1x8x128xf32>
    %122 = arith.mulf %121, %118 : vector<1x8x128xf32>
    %123 = arith.addf %113, %122 : vector<1x8x128xf32>
    %c1_i32_55 = arith.constant 1 : i32
    %cst_56 = arith.constant 0.000000e+00 : f32
    %124 = vector.broadcast %cst_56 : f32 to vector<1x8x128xf32>
    %c0_i32_57 = arith.constant 0 : i32
    %c2_i32_58 = arith.constant 2 : i32
    %125 = arith.addi %c0_i32_57, %c2_i32_58 : i32
    %c1_i32_59 = arith.constant 1 : i32
    %126 = scf.for %arg12 = %c0_i32_57 to %125 step %c1_i32_59 iter_args(%arg13 = %124) -> (vector<1x8x128xf32>)  : i32 {
      %c8_i32_156 = arith.constant 8 : i32
      %317 = arith.muli %arg12, %c8_i32_156 : i32
      %318 = tpu.assume_multiple %317, 8 : i32
      %319 = arith.index_cast %318 : i32 to index
      %c0_157 = arith.constant 0 : index
      %320 = vector.load %arg4[%319, %c0_157] : memref<16x128xf32, #tpu.memory_space<vmem>>, vector<8x128xf32>
      %c0_i32_158 = arith.constant 0 : i32
      %321 = arith.addi %318, %c0_i32_158 : i32
      %c1_i32_159 = arith.constant 1 : i32
      %322 = arith.muli %c1_i32_159, %321 : i32
      %c8_i32_160 = arith.constant 8 : i32
      %323 = arith.addi %c8_i32_160, %322 : i32
      %c0_161 = arith.constant 0 : index
      %324 = arith.index_cast %323 : i32 to index
      %c0_162 = arith.constant 0 : index
      %325 = vector.load %arg11[%c0_161, %324, %c0_162] : memref<1x32x128xf32, #tpu.memory_space<vmem>>, vector<1x8x128xf32>
      %326 = vector.extract_strided_slice %320 {offsets = [0, 0], sizes = [1, 128], strides = [1, 1]} : vector<8x128xf32> to vector<1x128xf32>
      %327 = vector.shape_cast %326 : vector<1x128xf32> to vector<1x1x128xf32>
      %328 = vector.broadcast %327 : vector<1x1x128xf32> to vector<1x8x128xf32>
      %329 = arith.mulf %328, %325 : vector<1x8x128xf32>
      %330 = arith.addf %arg13, %329 : vector<1x8x128xf32>
      %c1_i32_163 = arith.constant 1 : i32
      %331 = arith.addi %318, %c1_i32_163 : i32
      %c1_i32_164 = arith.constant 1 : i32
      %332 = arith.muli %c1_i32_164, %331 : i32
      %c8_i32_165 = arith.constant 8 : i32
      %333 = arith.addi %c8_i32_165, %332 : i32
      %c0_166 = arith.constant 0 : index
      %334 = arith.index_cast %333 : i32 to index
      %c0_167 = arith.constant 0 : index
      %335 = vector.load %arg11[%c0_166, %334, %c0_167] : memref<1x32x128xf32, #tpu.memory_space<vmem>>, vector<1x8x128xf32>
      %336 = vector.extract_strided_slice %320 {offsets = [1, 0], sizes = [1, 128], strides = [1, 1]} : vector<8x128xf32> to vector<1x128xf32>
      %337 = vector.shape_cast %336 : vector<1x128xf32> to vector<1x1x128xf32>
      %338 = vector.broadcast %337 : vector<1x1x128xf32> to vector<1x8x128xf32>
      %339 = arith.mulf %338, %335 : vector<1x8x128xf32>
      %340 = arith.addf %330, %339 : vector<1x8x128xf32>
      %c2_i32_168 = arith.constant 2 : i32
      %341 = arith.addi %318, %c2_i32_168 : i32
      %c1_i32_169 = arith.constant 1 : i32
      %342 = arith.muli %c1_i32_169, %341 : i32
      %c8_i32_170 = arith.constant 8 : i32
      %343 = arith.addi %c8_i32_170, %342 : i32
      %c0_171 = arith.constant 0 : index
      %344 = arith.index_cast %343 : i32 to index
      %c0_172 = arith.constant 0 : index
      %345 = vector.load %arg11[%c0_171, %344, %c0_172] : memref<1x32x128xf32, #tpu.memory_space<vmem>>, vector<1x8x128xf32>
      %346 = vector.extract_strided_slice %320 {offsets = [2, 0], sizes = [1, 128], strides = [1, 1]} : vector<8x128xf32> to vector<1x128xf32>
      %347 = vector.shape_cast %346 : vector<1x128xf32> to vector<1x1x128xf32>
      %348 = vector.broadcast %347 : vector<1x1x128xf32> to vector<1x8x128xf32>
      %349 = arith.mulf %348, %345 : vector<1x8x128xf32>
      %350 = arith.addf %340, %349 : vector<1x8x128xf32>
      %c3_i32_173 = arith.constant 3 : i32
      %351 = arith.addi %318, %c3_i32_173 : i32
      %c1_i32_174 = arith.constant 1 : i32
      %352 = arith.muli %c1_i32_174, %351 : i32
      %c8_i32_175 = arith.constant 8 : i32
      %353 = arith.addi %c8_i32_175, %352 : i32
      %c0_176 = arith.constant 0 : index
      %354 = arith.index_cast %353 : i32 to index
      %c0_177 = arith.constant 0 : index
      %355 = vector.load %arg11[%c0_176, %354, %c0_177] : memref<1x32x128xf32, #tpu.memory_space<vmem>>, vector<1x8x128xf32>
      %356 = vector.extract_strided_slice %320 {offsets = [3, 0], sizes = [1, 128], strides = [1, 1]} : vector<8x128xf32> to vector<1x128xf32>
      %357 = vector.shape_cast %356 : vector<1x128xf32> to vector<1x1x128xf32>
      %358 = vector.broadcast %357 : vector<1x1x128xf32> to vector<1x8x128xf32>
      %359 = arith.mulf %358, %355 : vector<1x8x128xf32>
      %360 = arith.addf %350, %359 : vector<1x8x128xf32>
      %c4_i32_178 = arith.constant 4 : i32
      %361 = arith.addi %318, %c4_i32_178 : i32
      %c1_i32_179 = arith.constant 1 : i32
      %362 = arith.muli %c1_i32_179, %361 : i32
      %c8_i32_180 = arith.constant 8 : i32
      %363 = arith.addi %c8_i32_180, %362 : i32
      %c0_181 = arith.constant 0 : index
      %364 = arith.index_cast %363 : i32 to index
      %c0_182 = arith.constant 0 : index
      %365 = vector.load %arg11[%c0_181, %364, %c0_182] : memref<1x32x128xf32, #tpu.memory_space<vmem>>, vector<1x8x128xf32>
      %366 = vector.extract_strided_slice %320 {offsets = [4, 0], sizes = [1, 128], strides = [1, 1]} : vector<8x128xf32> to vector<1x128xf32>
      %367 = vector.shape_cast %366 : vector<1x128xf32> to vector<1x1x128xf32>
      %368 = vector.broadcast %367 : vector<1x1x128xf32> to vector<1x8x128xf32>
      %369 = arith.mulf %368, %365 : vector<1x8x128xf32>
      %370 = arith.addf %360, %369 : vector<1x8x128xf32>
      %c5_i32_183 = arith.constant 5 : i32
      %371 = arith.addi %318, %c5_i32_183 : i32
      %c1_i32_184 = arith.constant 1 : i32
      %372 = arith.muli %c1_i32_184, %371 : i32
      %c8_i32_185 = arith.constant 8 : i32
      %373 = arith.addi %c8_i32_185, %372 : i32
      %c0_186 = arith.constant 0 : index
      %374 = arith.index_cast %373 : i32 to index
      %c0_187 = arith.constant 0 : index
      %375 = vector.load %arg11[%c0_186, %374, %c0_187] : memref<1x32x128xf32, #tpu.memory_space<vmem>>, vector<1x8x128xf32>
      %376 = vector.extract_strided_slice %320 {offsets = [5, 0], sizes = [1, 128], strides = [1, 1]} : vector<8x128xf32> to vector<1x128xf32>
      %377 = vector.shape_cast %376 : vector<1x128xf32> to vector<1x1x128xf32>
      %378 = vector.broadcast %377 : vector<1x1x128xf32> to vector<1x8x128xf32>
      %379 = arith.mulf %378, %375 : vector<1x8x128xf32>
      %380 = arith.addf %370, %379 : vector<1x8x128xf32>
      %c6_i32_188 = arith.constant 6 : i32
      %381 = arith.addi %318, %c6_i32_188 : i32
      %c1_i32_189 = arith.constant 1 : i32
      %382 = arith.muli %c1_i32_189, %381 : i32
      %c8_i32_190 = arith.constant 8 : i32
      %383 = arith.addi %c8_i32_190, %382 : i32
      %c0_191 = arith.constant 0 : index
      %384 = arith.index_cast %383 : i32 to index
      %c0_192 = arith.constant 0 : index
      %385 = vector.load %arg11[%c0_191, %384, %c0_192] : memref<1x32x128xf32, #tpu.memory_space<vmem>>, vector<1x8x128xf32>
      %386 = vector.extract_strided_slice %320 {offsets = [6, 0], sizes = [1, 128], strides = [1, 1]} : vector<8x128xf32> to vector<1x128xf32>
      %387 = vector.shape_cast %386 : vector<1x128xf32> to vector<1x1x128xf32>
      %388 = vector.broadcast %387 : vector<1x1x128xf32> to vector<1x8x128xf32>
      %389 = arith.mulf %388, %385 : vector<1x8x128xf32>
      %390 = arith.addf %380, %389 : vector<1x8x128xf32>
      %c7_i32_193 = arith.constant 7 : i32
      %391 = arith.addi %318, %c7_i32_193 : i32
      %c1_i32_194 = arith.constant 1 : i32
      %392 = arith.muli %c1_i32_194, %391 : i32
      %c8_i32_195 = arith.constant 8 : i32
      %393 = arith.addi %c8_i32_195, %392 : i32
      %c0_196 = arith.constant 0 : index
      %394 = arith.index_cast %393 : i32 to index
      %c0_197 = arith.constant 0 : index
      %395 = vector.load %arg11[%c0_196, %394, %c0_197] : memref<1x32x128xf32, #tpu.memory_space<vmem>>, vector<1x8x128xf32>
      %396 = vector.extract_strided_slice %320 {offsets = [7, 0], sizes = [1, 128], strides = [1, 1]} : vector<8x128xf32> to vector<1x128xf32>
      %397 = vector.shape_cast %396 : vector<1x128xf32> to vector<1x1x128xf32>
      %398 = vector.broadcast %397 : vector<1x1x128xf32> to vector<1x8x128xf32>
      %399 = arith.mulf %398, %395 : vector<1x8x128xf32>
      %400 = arith.addf %390, %399 : vector<1x8x128xf32>
      scf.yield %400 : vector<1x8x128xf32>
    }
    %c2_i32_60 = arith.constant 2 : i32
    %cst_61 = arith.constant 5.000000e-01 : f32
    %127 = vector.broadcast %cst_61 : f32 to vector<1x8x128xf32>
    %128 = arith.mulf %127, %123 : vector<1x8x128xf32>
    %cst_62 = arith.constant 4.471500e-02 : f32
    %129 = vector.broadcast %cst_62 : f32 to vector<1x8x128xf32>
    %130 = arith.mulf %129, %123 : vector<1x8x128xf32>
    %131 = arith.mulf %130, %123 : vector<1x8x128xf32>
    %132 = arith.mulf %131, %123 : vector<1x8x128xf32>
    %133 = arith.addf %123, %132 : vector<1x8x128xf32>
    %cst_63 = arith.constant 0.797884583 : f32
    %134 = vector.broadcast %cst_63 : f32 to vector<1x8x128xf32>
    %135 = arith.mulf %134, %133 : vector<1x8x128xf32>
    %136 = math.tanh %135 : vector<1x8x128xf32>
    %cst_64 = arith.constant 1.000000e+00 : f32
    %137 = vector.broadcast %cst_64 : f32 to vector<1x8x128xf32>
    %138 = arith.addf %137, %136 : vector<1x8x128xf32>
    %139 = arith.mulf %128, %138 : vector<1x8x128xf32>
    %140 = vector.shape_cast %139 : vector<1x8x128xf32> to vector<8x128xf32>
    %141 = arith.truncf %140 : vector<8x128xf32> to vector<8x128xbf16>
    %cst_65 = arith.constant 5.000000e-01 : f32
    %142 = vector.broadcast %cst_65 : f32 to vector<1x8x128xf32>
    %143 = arith.mulf %142, %126 : vector<1x8x128xf32>
    %cst_66 = arith.constant 4.471500e-02 : f32
    %144 = vector.broadcast %cst_66 : f32 to vector<1x8x128xf32>
    %145 = arith.mulf %144, %126 : vector<1x8x128xf32>
    %146 = arith.mulf %145, %126 : vector<1x8x128xf32>
    %147 = arith.mulf %146, %126 : vector<1x8x128xf32>
    %148 = arith.addf %126, %147 : vector<1x8x128xf32>
    %cst_67 = arith.constant 0.797884583 : f32
    %149 = vector.broadcast %cst_67 : f32 to vector<1x8x128xf32>
    %150 = arith.mulf %149, %148 : vector<1x8x128xf32>
    %151 = math.tanh %150 : vector<1x8x128xf32>
    %cst_68 = arith.constant 1.000000e+00 : f32
    %152 = vector.broadcast %cst_68 : f32 to vector<1x8x128xf32>
    %153 = arith.addf %152, %151 : vector<1x8x128xf32>
    %154 = arith.mulf %143, %153 : vector<1x8x128xf32>
    %155 = vector.shape_cast %154 : vector<1x8x128xf32> to vector<8x128xf32>
    %156 = arith.truncf %155 : vector<8x128xf32> to vector<8x128xbf16>
    %c0_69 = arith.constant 0 : index
    %c0_70 = arith.constant 0 : index
    %157 = vector.load %arg5[%c0_69, %c0_70] : memref<128x256xbf16, #tpu.memory_space<vmem>>, vector<128x256xbf16>
    %cst_71 = arith.constant dense<0.000000e+00> : vector<8x256xf32>
    %158 = tpu.matmul %141, %157, %cst_71 {dimension_numbers = #tpu.dot_dimension_numbers<[1], [0], [0], [1], [0, 0, 1, 1], [], []>} : vector<8x128xbf16>, vector<128x256xbf16>, vector<8x256xf32> -> vector<8x256xf32>
    %c0_72 = arith.constant 0 : index
    %c0_73 = arith.constant 0 : index
    %159 = vector.load %arg6[%c0_72, %c0_73] : memref<128x256xbf16, #tpu.memory_space<vmem>>, vector<128x256xbf16>
    %cst_74 = arith.constant dense<0.000000e+00> : vector<8x256xf32>
    %160 = tpu.matmul %156, %159, %cst_74 {dimension_numbers = #tpu.dot_dimension_numbers<[1], [0], [0], [1], [0, 0, 1, 1], [], []>} : vector<8x128xbf16>, vector<128x256xbf16>, vector<8x256xf32> -> vector<8x256xf32>
    %161 = arith.addf %158, %160 : vector<8x256xf32>
    %c0_75 = arith.constant 0 : index
    %c0_76 = arith.constant 0 : index
    %162 = vector.load %arg7[%c0_75, %c0_76] : memref<1x256xf32, #tpu.memory_space<vmem>>, vector<1x256xf32>
    %163 = vector.broadcast %162 : vector<1x256xf32> to vector<8x256xf32>
    %164 = arith.addf %161, %163 : vector<8x256xf32>
    %165 = vector.extract_strided_slice %164 {offsets = [0, 0], sizes = [8, 128], strides = [1, 1]} : vector<8x256xf32> to vector<8x128xf32>
    %166 = vector.extract_strided_slice %164 {offsets = [0, 128], sizes = [8, 128], strides = [1, 1]} : vector<8x256xf32> to vector<8x128xf32>
    %167 = arith.negf %166 : vector<8x128xf32>
    %168 = math.exp %167 : vector<8x128xf32>
    %cst_77 = arith.constant 1.000000e+00 : f32
    %169 = vector.broadcast %cst_77 : f32 to vector<8x128xf32>
    %170 = arith.addf %169, %168 : vector<8x128xf32>
    %171 = arith.divf %169, %170 : vector<8x128xf32>
    %172 = arith.mulf %165, %171 : vector<8x128xf32>
    %c0_78 = arith.constant 0 : index
    %c0_79 = arith.constant 0 : index
    %c0_80 = arith.constant 0 : index
    %173 = vector.load %arg1[%c0_78, %c0_79, %c0_80] : memref<1x16x128xf32, #tpu.memory_space<vmem>>, vector<1x8x128xf32>
    %174 = vector.shape_cast %173 : vector<1x8x128xf32> to vector<8x128xf32>
    %175 = arith.addf %172, %174 : vector<8x128xf32>
    %176 = vector.shape_cast %175 : vector<8x128xf32> to vector<1x8x128xf32>
    %c0_81 = arith.constant 0 : index
    %c0_82 = arith.constant 0 : index
    %c0_83 = arith.constant 0 : index
    %177 = vector.load %arg10[%c0_81, %c0_82, %c0_83] : memref<1x16x128xf32, #tpu.memory_space<vmem>>, vector<1x8x128xf32>
    tpu.vector_store %arg10[%c0_81, %c0_82, %c0_83], %176 {strides = array<i32>} : memref<1x16x128xf32, #tpu.memory_space<vmem>>, vector<1x8x128xf32>,
    %cst_84 = arith.constant 0.000000e+00 : f32
    %178 = vector.broadcast %cst_84 : f32 to vector<1x8x128xf32>
    %c0_i32_85 = arith.constant 0 : i32
    %c2_i32_86 = arith.constant 2 : i32
    %179 = arith.addi %c0_i32_85, %c2_i32_86 : i32
    %c1_i32_87 = arith.constant 1 : i32
    %180 = scf.for %arg12 = %c0_i32_85 to %179 step %c1_i32_87 iter_args(%arg13 = %178) -> (vector<1x8x128xf32>)  : i32 {
      %c8_i32_156 = arith.constant 8 : i32
      %317 = arith.muli %arg12, %c8_i32_156 : i32
      %318 = tpu.assume_multiple %317, 8 : i32
      %319 = arith.index_cast %318 : i32 to index
      %c0_157 = arith.constant 0 : index
      %320 = vector.load %arg3[%319, %c0_157] : memref<16x128xf32, #tpu.memory_space<vmem>>, vector<8x128xf32>
      %c0_i32_158 = arith.constant 0 : i32
      %321 = arith.addi %318, %c0_i32_158 : i32
      %c-1_i32_159 = arith.constant -1 : i32
      %322 = arith.muli %c-1_i32_159, %321 : i32
      %c16_i32_160 = arith.constant 16 : i32
      %323 = arith.addi %c16_i32_160, %322 : i32
      %c0_161 = arith.constant 0 : index
      %324 = arith.index_cast %323 : i32 to index
      %c0_162 = arith.constant 0 : index
      %325 = vector.load %arg11[%c0_161, %324, %c0_162] : memref<1x32x128xf32, #tpu.memory_space<vmem>>, vector<1x8x128xf32>
      %326 = vector.extract_strided_slice %320 {offsets = [0, 0], sizes = [1, 128], strides = [1, 1]} : vector<8x128xf32> to vector<1x128xf32>
      %327 = vector.shape_cast %326 : vector<1x128xf32> to vector<1x1x128xf32>
      %328 = vector.broadcast %327 : vector<1x1x128xf32> to vector<1x8x128xf32>
      %329 = arith.mulf %328, %325 : vector<1x8x128xf32>
      %330 = arith.addf %arg13, %329 : vector<1x8x128xf32>
      %c1_i32_163 = arith.constant 1 : i32
      %331 = arith.addi %318, %c1_i32_163 : i32
      %c-1_i32_164 = arith.constant -1 : i32
      %332 = arith.muli %c-1_i32_164, %331 : i32
      %c16_i32_165 = arith.constant 16 : i32
      %333 = arith.addi %c16_i32_165, %332 : i32
      %c0_166 = arith.constant 0 : index
      %334 = arith.index_cast %333 : i32 to index
      %c0_167 = arith.constant 0 : index
      %335 = vector.load %arg11[%c0_166, %334, %c0_167] : memref<1x32x128xf32, #tpu.memory_space<vmem>>, vector<1x8x128xf32>
      %336 = vector.extract_strided_slice %320 {offsets = [1, 0], sizes = [1, 128], strides = [1, 1]} : vector<8x128xf32> to vector<1x128xf32>
      %337 = vector.shape_cast %336 : vector<1x128xf32> to vector<1x1x128xf32>
      %338 = vector.broadcast %337 : vector<1x1x128xf32> to vector<1x8x128xf32>
      %339 = arith.mulf %338, %335 : vector<1x8x128xf32>
      %340 = arith.addf %330, %339 : vector<1x8x128xf32>
      %c2_i32_168 = arith.constant 2 : i32
      %341 = arith.addi %318, %c2_i32_168 : i32
      %c-1_i32_169 = arith.constant -1 : i32
      %342 = arith.muli %c-1_i32_169, %341 : i32
      %c16_i32_170 = arith.constant 16 : i32
      %343 = arith.addi %c16_i32_170, %342 : i32
      %c0_171 = arith.constant 0 : index
      %344 = arith.index_cast %343 : i32 to index
      %c0_172 = arith.constant 0 : index
      %345 = vector.load %arg11[%c0_171, %344, %c0_172] : memref<1x32x128xf32, #tpu.memory_space<vmem>>, vector<1x8x128xf32>
      %346 = vector.extract_strided_slice %320 {offsets = [2, 0], sizes = [1, 128], strides = [1, 1]} : vector<8x128xf32> to vector<1x128xf32>
      %347 = vector.shape_cast %346 : vector<1x128xf32> to vector<1x1x128xf32>
      %348 = vector.broadcast %347 : vector<1x1x128xf32> to vector<1x8x128xf32>
      %349 = arith.mulf %348, %345 : vector<1x8x128xf32>
      %350 = arith.addf %340, %349 : vector<1x8x128xf32>
      %c3_i32_173 = arith.constant 3 : i32
      %351 = arith.addi %318, %c3_i32_173 : i32
      %c-1_i32_174 = arith.constant -1 : i32
      %352 = arith.muli %c-1_i32_174, %351 : i32
      %c16_i32_175 = arith.constant 16 : i32
      %353 = arith.addi %c16_i32_175, %352 : i32
      %c0_176 = arith.constant 0 : index
      %354 = arith.index_cast %353 : i32 to index
      %c0_177 = arith.constant 0 : index
      %355 = vector.load %arg11[%c0_176, %354, %c0_177] : memref<1x32x128xf32, #tpu.memory_space<vmem>>, vector<1x8x128xf32>
      %356 = vector.extract_strided_slice %320 {offsets = [3, 0], sizes = [1, 128], strides = [1, 1]} : vector<8x128xf32> to vector<1x128xf32>
      %357 = vector.shape_cast %356 : vector<1x128xf32> to vector<1x1x128xf32>
      %358 = vector.broadcast %357 : vector<1x1x128xf32> to vector<1x8x128xf32>
      %359 = arith.mulf %358, %355 : vector<1x8x128xf32>
      %360 = arith.addf %350, %359 : vector<1x8x128xf32>
      %c4_i32_178 = arith.constant 4 : i32
      %361 = arith.addi %318, %c4_i32_178 : i32
      %c-1_i32_179 = arith.constant -1 : i32
      %362 = arith.muli %c-1_i32_179, %361 : i32
      %c16_i32_180 = arith.constant 16 : i32
      %363 = arith.addi %c16_i32_180, %362 : i32
      %c0_181 = arith.constant 0 : index
      %364 = arith.index_cast %363 : i32 to index
      %c0_182 = arith.constant 0 : index
      %365 = vector.load %arg11[%c0_181, %364, %c0_182] : memref<1x32x128xf32, #tpu.memory_space<vmem>>, vector<1x8x128xf32>
      %366 = vector.extract_strided_slice %320 {offsets = [4, 0], sizes = [1, 128], strides = [1, 1]} : vector<8x128xf32> to vector<1x128xf32>
      %367 = vector.shape_cast %366 : vector<1x128xf32> to vector<1x1x128xf32>
      %368 = vector.broadcast %367 : vector<1x1x128xf32> to vector<1x8x128xf32>
      %369 = arith.mulf %368, %365 : vector<1x8x128xf32>
      %370 = arith.addf %360, %369 : vector<1x8x128xf32>
      %c5_i32_183 = arith.constant 5 : i32
      %371 = arith.addi %318, %c5_i32_183 : i32
      %c-1_i32_184 = arith.constant -1 : i32
      %372 = arith.muli %c-1_i32_184, %371 : i32
      %c16_i32_185 = arith.constant 16 : i32
      %373 = arith.addi %c16_i32_185, %372 : i32
      %c0_186 = arith.constant 0 : index
      %374 = arith.index_cast %373 : i32 to index
      %c0_187 = arith.constant 0 : index
      %375 = vector.load %arg11[%c0_186, %374, %c0_187] : memref<1x32x128xf32, #tpu.memory_space<vmem>>, vector<1x8x128xf32>
      %376 = vector.extract_strided_slice %320 {offsets = [5, 0], sizes = [1, 128], strides = [1, 1]} : vector<8x128xf32> to vector<1x128xf32>
      %377 = vector.shape_cast %376 : vector<1x128xf32> to vector<1x1x128xf32>
      %378 = vector.broadcast %377 : vector<1x1x128xf32> to vector<1x8x128xf32>
      %379 = arith.mulf %378, %375 : vector<1x8x128xf32>
      %380 = arith.addf %370, %379 : vector<1x8x128xf32>
      %c6_i32_188 = arith.constant 6 : i32
      %381 = arith.addi %318, %c6_i32_188 : i32
      %c-1_i32_189 = arith.constant -1 : i32
      %382 = arith.muli %c-1_i32_189, %381 : i32
      %c16_i32_190 = arith.constant 16 : i32
      %383 = arith.addi %c16_i32_190, %382 : i32
      %c0_191 = arith.constant 0 : index
      %384 = arith.index_cast %383 : i32 to index
      %c0_192 = arith.constant 0 : index
      %385 = vector.load %arg11[%c0_191, %384, %c0_192] : memref<1x32x128xf32, #tpu.memory_space<vmem>>, vector<1x8x128xf32>
      %386 = vector.extract_strided_slice %320 {offsets = [6, 0], sizes = [1, 128], strides = [1, 1]} : vector<8x128xf32> to vector<1x128xf32>
      %387 = vector.shape_cast %386 : vector<1x128xf32> to vector<1x1x128xf32>
      %388 = vector.broadcast %387 : vector<1x1x128xf32> to vector<1x8x128xf32>
      %389 = arith.mulf %388, %385 : vector<1x8x128xf32>
      %390 = arith.addf %380, %389 : vector<1x8x128xf32>
      %c7_i32_193 = arith.constant 7 : i32
      %391 = arith.addi %318, %c7_i32_193 : i32
      %c-1_i32_194 = arith.constant -1 : i32
      %392 = arith.muli %c-1_i32_194, %391 : i32
      %c16_i32_195 = arith.constant 16 : i32
      %393 = arith.addi %c16_i32_195, %392 : i32
      %c0_196 = arith.constant 0 : index
      %394 = arith.index_cast %393 : i32 to index
      %c0_197 = arith.constant 0 : index
      %395 = vector.load %arg11[%c0_196, %394, %c0_197] : memref<1x32x128xf32, #tpu.memory_space<vmem>>, vector<1x8x128xf32>
      %396 = vector.extract_strided_slice %320 {offsets = [7, 0], sizes = [1, 128], strides = [1, 1]} : vector<8x128xf32> to vector<1x128xf32>
      %397 = vector.shape_cast %396 : vector<1x128xf32> to vector<1x1x128xf32>
      %398 = vector.broadcast %397 : vector<1x1x128xf32> to vector<1x8x128xf32>
      %399 = arith.mulf %398, %395 : vector<1x8x128xf32>
      %400 = arith.addf %390, %399 : vector<1x8x128xf32>
      scf.yield %400 : vector<1x8x128xf32>
    }
    %c2_i32_88 = arith.constant 2 : i32
    %cst_89 = arith.constant 0.000000e+00 : f32
    %181 = vector.broadcast %cst_89 : f32 to vector<1x8x128xf32>
    %c0_i32_90 = arith.constant 0 : i32
    %c8_i32_91 = arith.constant 8 : i32
    %182 = arith.muli %c0_i32_90, %c8_i32_91 : i32
    %183 = tpu.assume_multiple %182, 8 : i32
    %184 = arith.index_cast %183 : i32 to index
    %c0_92 = arith.constant 0 : index
    %185 = vector.load %arg4[%184, %c0_92] : memref<16x128xf32, #tpu.memory_space<vmem>>, vector<8x128xf32>
    %c0_i32_93 = arith.constant 0 : i32
    %186 = arith.addi %183, %c0_i32_93 : i32
    %c1_i32_94 = arith.constant 1 : i32
    %187 = arith.muli %c1_i32_94, %186 : i32
    %c16_i32 = arith.constant 16 : i32
    %188 = arith.addi %c16_i32, %187 : i32
    %c0_95 = arith.constant 0 : index
    %189 = arith.index_cast %188 : i32 to index
    %c0_96 = arith.constant 0 : index
    %190 = vector.load %arg11[%c0_95, %189, %c0_96] : memref<1x32x128xf32, #tpu.memory_space<vmem>>, vector<1x8x128xf32>
    %191 = vector.extract_strided_slice %185 {offsets = [0, 0], sizes = [1, 128], strides = [1, 1]} : vector<8x128xf32> to vector<1x128xf32>
    %192 = vector.shape_cast %191 : vector<1x128xf32> to vector<1x1x128xf32>
    %193 = vector.broadcast %192 : vector<1x1x128xf32> to vector<1x8x128xf32>
    %194 = arith.mulf %193, %190 : vector<1x8x128xf32>
    %195 = arith.addf %181, %194 : vector<1x8x128xf32>
    %c1_i32_97 = arith.constant 1 : i32
    %196 = arith.addi %183, %c1_i32_97 : i32
    %c1_i32_98 = arith.constant 1 : i32
    %197 = arith.muli %c1_i32_98, %196 : i32
    %c16_i32_99 = arith.constant 16 : i32
    %198 = arith.addi %c16_i32_99, %197 : i32
    %c0_100 = arith.constant 0 : index
    %199 = arith.index_cast %198 : i32 to index
    %c0_101 = arith.constant 0 : index
    %200 = vector.load %arg11[%c0_100, %199, %c0_101] : memref<1x32x128xf32, #tpu.memory_space<vmem>>, vector<1x8x128xf32>
    %201 = vector.extract_strided_slice %185 {offsets = [1, 0], sizes = [1, 128], strides = [1, 1]} : vector<8x128xf32> to vector<1x128xf32>
    %202 = vector.shape_cast %201 : vector<1x128xf32> to vector<1x1x128xf32>
    %203 = vector.broadcast %202 : vector<1x1x128xf32> to vector<1x8x128xf32>
    %204 = arith.mulf %203, %200 : vector<1x8x128xf32>
    %205 = arith.addf %195, %204 : vector<1x8x128xf32>
    %c2_i32_102 = arith.constant 2 : i32
    %206 = arith.addi %183, %c2_i32_102 : i32
    %c1_i32_103 = arith.constant 1 : i32
    %207 = arith.muli %c1_i32_103, %206 : i32
    %c16_i32_104 = arith.constant 16 : i32
    %208 = arith.addi %c16_i32_104, %207 : i32
    %c0_105 = arith.constant 0 : index
    %209 = arith.index_cast %208 : i32 to index
    %c0_106 = arith.constant 0 : index
    %210 = vector.load %arg11[%c0_105, %209, %c0_106] : memref<1x32x128xf32, #tpu.memory_space<vmem>>, vector<1x8x128xf32>
    %211 = vector.extract_strided_slice %185 {offsets = [2, 0], sizes = [1, 128], strides = [1, 1]} : vector<8x128xf32> to vector<1x128xf32>
    %212 = vector.shape_cast %211 : vector<1x128xf32> to vector<1x1x128xf32>
    %213 = vector.broadcast %212 : vector<1x1x128xf32> to vector<1x8x128xf32>
    %214 = arith.mulf %213, %210 : vector<1x8x128xf32>
    %215 = arith.addf %205, %214 : vector<1x8x128xf32>
    %c3_i32_107 = arith.constant 3 : i32
    %216 = arith.addi %183, %c3_i32_107 : i32
    %c1_i32_108 = arith.constant 1 : i32
    %217 = arith.muli %c1_i32_108, %216 : i32
    %c16_i32_109 = arith.constant 16 : i32
    %218 = arith.addi %c16_i32_109, %217 : i32
    %c0_110 = arith.constant 0 : index
    %219 = arith.index_cast %218 : i32 to index
    %c0_111 = arith.constant 0 : index
    %220 = vector.load %arg11[%c0_110, %219, %c0_111] : memref<1x32x128xf32, #tpu.memory_space<vmem>>, vector<1x8x128xf32>
    %221 = vector.extract_strided_slice %185 {offsets = [3, 0], sizes = [1, 128], strides = [1, 1]} : vector<8x128xf32> to vector<1x128xf32>
    %222 = vector.shape_cast %221 : vector<1x128xf32> to vector<1x1x128xf32>
    %223 = vector.broadcast %222 : vector<1x1x128xf32> to vector<1x8x128xf32>
    %224 = arith.mulf %223, %220 : vector<1x8x128xf32>
    %225 = arith.addf %215, %224 : vector<1x8x128xf32>
    %c4_i32_112 = arith.constant 4 : i32
    %226 = arith.addi %183, %c4_i32_112 : i32
    %c1_i32_113 = arith.constant 1 : i32
    %227 = arith.muli %c1_i32_113, %226 : i32
    %c16_i32_114 = arith.constant 16 : i32
    %228 = arith.addi %c16_i32_114, %227 : i32
    %c0_115 = arith.constant 0 : index
    %229 = arith.index_cast %228 : i32 to index
    %c0_116 = arith.constant 0 : index
    %230 = vector.load %arg11[%c0_115, %229, %c0_116] : memref<1x32x128xf32, #tpu.memory_space<vmem>>, vector<1x8x128xf32>
    %231 = vector.extract_strided_slice %185 {offsets = [4, 0], sizes = [1, 128], strides = [1, 1]} : vector<8x128xf32> to vector<1x128xf32>
    %232 = vector.shape_cast %231 : vector<1x128xf32> to vector<1x1x128xf32>
    %233 = vector.broadcast %232 : vector<1x1x128xf32> to vector<1x8x128xf32>
    %234 = arith.mulf %233, %230 : vector<1x8x128xf32>
    %235 = arith.addf %225, %234 : vector<1x8x128xf32>
    %c5_i32_117 = arith.constant 5 : i32
    %236 = arith.addi %183, %c5_i32_117 : i32
    %c1_i32_118 = arith.constant 1 : i32
    %237 = arith.muli %c1_i32_118, %236 : i32
    %c16_i32_119 = arith.constant 16 : i32
    %238 = arith.addi %c16_i32_119, %237 : i32
    %c0_120 = arith.constant 0 : index
    %239 = arith.index_cast %238 : i32 to index
    %c0_121 = arith.constant 0 : index
    %240 = vector.load %arg11[%c0_120, %239, %c0_121] : memref<1x32x128xf32, #tpu.memory_space<vmem>>, vector<1x8x128xf32>
    %241 = vector.extract_strided_slice %185 {offsets = [5, 0], sizes = [1, 128], strides = [1, 1]} : vector<8x128xf32> to vector<1x128xf32>
    %242 = vector.shape_cast %241 : vector<1x128xf32> to vector<1x1x128xf32>
    %243 = vector.broadcast %242 : vector<1x1x128xf32> to vector<1x8x128xf32>
    %244 = arith.mulf %243, %240 : vector<1x8x128xf32>
    %245 = arith.addf %235, %244 : vector<1x8x128xf32>
    %c6_i32_122 = arith.constant 6 : i32
    %246 = arith.addi %183, %c6_i32_122 : i32
    %c1_i32_123 = arith.constant 1 : i32
    %247 = arith.muli %c1_i32_123, %246 : i32
    %c16_i32_124 = arith.constant 16 : i32
    %248 = arith.addi %c16_i32_124, %247 : i32
    %c0_125 = arith.constant 0 : index
    %249 = arith.index_cast %248 : i32 to index
    %c0_126 = arith.constant 0 : index
    %250 = vector.load %arg11[%c0_125, %249, %c0_126] : memref<1x32x128xf32, #tpu.memory_space<vmem>>, vector<1x8x128xf32>
    %251 = vector.extract_strided_slice %185 {offsets = [6, 0], sizes = [1, 128], strides = [1, 1]} : vector<8x128xf32> to vector<1x128xf32>
    %252 = vector.shape_cast %251 : vector<1x128xf32> to vector<1x1x128xf32>
    %253 = vector.broadcast %252 : vector<1x1x128xf32> to vector<1x8x128xf32>
    %254 = arith.mulf %253, %250 : vector<1x8x128xf32>
    %255 = arith.addf %245, %254 : vector<1x8x128xf32>
    %c7_i32_127 = arith.constant 7 : i32
    %256 = arith.addi %183, %c7_i32_127 : i32
    %c1_i32_128 = arith.constant 1 : i32
    %257 = arith.muli %c1_i32_128, %256 : i32
    %c16_i32_129 = arith.constant 16 : i32
    %258 = arith.addi %c16_i32_129, %257 : i32
    %c0_130 = arith.constant 0 : index
    %259 = arith.index_cast %258 : i32 to index
    %c0_131 = arith.constant 0 : index
    %260 = vector.load %arg11[%c0_130, %259, %c0_131] : memref<1x32x128xf32, #tpu.memory_space<vmem>>, vector<1x8x128xf32>
    %261 = vector.extract_strided_slice %185 {offsets = [7, 0], sizes = [1, 128], strides = [1, 1]} : vector<8x128xf32> to vector<1x128xf32>
    %262 = vector.shape_cast %261 : vector<1x128xf32> to vector<1x1x128xf32>
    %263 = vector.broadcast %262 : vector<1x1x128xf32> to vector<1x8x128xf32>
    %264 = arith.mulf %263, %260 : vector<1x8x128xf32>
    %265 = arith.addf %255, %264 : vector<1x8x128xf32>
    %c1_i32_132 = arith.constant 1 : i32
    %cst_133 = arith.constant 5.000000e-01 : f32
    %266 = vector.broadcast %cst_133 : f32 to vector<1x8x128xf32>
    %267 = arith.mulf %266, %180 : vector<1x8x128xf32>
    %cst_134 = arith.constant 4.471500e-02 : f32
    %268 = vector.broadcast %cst_134 : f32 to vector<1x8x128xf32>
    %269 = arith.mulf %268, %180 : vector<1x8x128xf32>
    %270 = arith.mulf %269, %180 : vector<1x8x128xf32>
    %271 = arith.mulf %270, %180 : vector<1x8x128xf32>
    %272 = arith.addf %180, %271 : vector<1x8x128xf32>
    %cst_135 = arith.constant 0.797884583 : f32
    %273 = vector.broadcast %cst_135 : f32 to vector<1x8x128xf32>
    %274 = arith.mulf %273, %272 : vector<1x8x128xf32>
    %275 = math.tanh %274 : vector<1x8x128xf32>
    %cst_136 = arith.constant 1.000000e+00 : f32
    %276 = vector.broadcast %cst_136 : f32 to vector<1x8x128xf32>
    %277 = arith.addf %276, %275 : vector<1x8x128xf32>
    %278 = arith.mulf %267, %277 : vector<1x8x128xf32>
    %279 = vector.shape_cast %278 : vector<1x8x128xf32> to vector<8x128xf32>
    %280 = arith.truncf %279 : vector<8x128xf32> to vector<8x128xbf16>
    %cst_137 = arith.constant 5.000000e-01 : f32
    %281 = vector.broadcast %cst_137 : f32 to vector<1x8x128xf32>
    %282 = arith.mulf %281, %265 : vector<1x8x128xf32>
    %cst_138 = arith.constant 4.471500e-02 : f32
    %283 = vector.broadcast %cst_138 : f32 to vector<1x8x128xf32>
    %284 = arith.mulf %283, %265 : vector<1x8x128xf32>
    %285 = arith.mulf %284, %265 : vector<1x8x128xf32>
    %286 = arith.mulf %285, %265 : vector<1x8x128xf32>
    %287 = arith.addf %265, %286 : vector<1x8x128xf32>
    %cst_139 = arith.constant 0.797884583 : f32
    %288 = vector.broadcast %cst_139 : f32 to vector<1x8x128xf32>
    %289 = arith.mulf %288, %287 : vector<1x8x128xf32>
    %290 = math.tanh %289 : vector<1x8x128xf32>
    %cst_140 = arith.constant 1.000000e+00 : f32
    %291 = vector.broadcast %cst_140 : f32 to vector<1x8x128xf32>
    %292 = arith.addf %291, %290 : vector<1x8x128xf32>
    %293 = arith.mulf %282, %292 : vector<1x8x128xf32>
    %294 = vector.shape_cast %293 : vector<1x8x128xf32> to vector<8x128xf32>
    %295 = arith.truncf %294 : vector<8x128xf32> to vector<8x128xbf16>
    %c0_141 = arith.constant 0 : index
    %c0_142 = arith.constant 0 : index
    %296 = vector.load %arg5[%c0_141, %c0_142] : memref<128x256xbf16, #tpu.memory_space<vmem>>, vector<128x256xbf16>
    %cst_143 = arith.constant dense<0.000000e+00> : vector<8x256xf32>
    %297 = tpu.matmul %280, %296, %cst_143 {dimension_numbers = #tpu.dot_dimension_numbers<[1], [0], [0], [1], [0, 0, 1, 1], [], []>} : vector<8x128xbf16>, vector<128x256xbf16>, vector<8x256xf32> -> vector<8x256xf32>
    %c0_144 = arith.constant 0 : index
    %c0_145 = arith.constant 0 : index
    %298 = vector.load %arg6[%c0_144, %c0_145] : memref<128x256xbf16, #tpu.memory_space<vmem>>, vector<128x256xbf16>
    %cst_146 = arith.constant dense<0.000000e+00> : vector<8x256xf32>
    %299 = tpu.matmul %295, %298, %cst_146 {dimension_numbers = #tpu.dot_dimension_numbers<[1], [0], [0], [1], [0, 0, 1, 1], [], []>} : vector<8x128xbf16>, vector<128x256xbf16>, vector<8x256xf32> -> vector<8x256xf32>
    %300 = arith.addf %297, %299 : vector<8x256xf32>
    %c0_147 = arith.constant 0 : index
    %c0_148 = arith.constant 0 : index
    %301 = vector.load %arg7[%c0_147, %c0_148] : memref<1x256xf32, #tpu.memory_space<vmem>>, vector<1x256xf32>
    %302 = vector.broadcast %301 : vector<1x256xf32> to vector<8x256xf32>
    %303 = arith.addf %300, %302 : vector<8x256xf32>
    %304 = vector.extract_strided_slice %303 {offsets = [0, 0], sizes = [8, 128], strides = [1, 1]} : vector<8x256xf32> to vector<8x128xf32>
    %305 = vector.extract_strided_slice %303 {offsets = [0, 128], sizes = [8, 128], strides = [1, 1]} : vector<8x256xf32> to vector<8x128xf32>
    %306 = arith.negf %305 : vector<8x128xf32>
    %307 = math.exp %306 : vector<8x128xf32>
    %cst_149 = arith.constant 1.000000e+00 : f32
    %308 = vector.broadcast %cst_149 : f32 to vector<8x128xf32>
    %309 = arith.addf %308, %307 : vector<8x128xf32>
    %310 = arith.divf %308, %309 : vector<8x128xf32>
    %311 = arith.mulf %304, %310 : vector<8x128xf32>
    %c0_150 = arith.constant 0 : index
    %c8_151 = arith.constant 8 : index
    %c0_152 = arith.constant 0 : index
    %312 = vector.load %arg1[%c0_150, %c8_151, %c0_152] : memref<1x16x128xf32, #tpu.memory_space<vmem>>, vector<1x8x128xf32>
    %313 = vector.shape_cast %312 : vector<1x8x128xf32> to vector<8x128xf32>
    %314 = arith.addf %311, %313 : vector<8x128xf32>
    %315 = vector.shape_cast %314 : vector<8x128xf32> to vector<1x8x128xf32>
    %c0_153 = arith.constant 0 : index
    %c8_154 = arith.constant 8 : index
    %c0_155 = arith.constant 0 : index
    %316 = vector.load %arg10[%c0_153, %c8_154, %c0_155] : memref<1x16x128xf32, #tpu.memory_space<vmem>>, vector<1x8x128xf32>
    tpu.vector_store %arg10[%c0_153, %c8_154, %c0_155], %315 {strides = array<i32>} : memref<1x16x128xf32, #tpu.memory_space<vmem>>, vector<1x8x128xf32>,
    return
  }
  func.func @transform_0(%arg0: i32) -> (i32, i32, i32) {
    %c0_i32 = arith.constant 0 : i32
    %c0_i32_0 = arith.constant 0 : i32
    %c0_i32_1 = arith.constant 0 : i32
    return %arg0, %c0_i32, %c0_i32_0 : i32, i32, i32
  }
  func.func @transform_1(%arg0: i32) -> (i32, i32, i32) {
    %c0_i32 = arith.constant 0 : i32
    %c0_i32_0 = arith.constant 0 : i32
    %c0_i32_1 = arith.constant 0 : i32
    return %arg0, %c0_i32, %c0_i32_0 : i32, i32, i32
  }
  func.func @transform_2(%arg0: i32) -> (i32, i32) {
    %c0_i32 = arith.constant 0 : i32
    %c0_i32_0 = arith.constant 0 : i32
    %c0_i32_1 = arith.constant 0 : i32
    return %c0_i32, %c0_i32_0 : i32, i32
  }
  func.func @transform_3(%arg0: i32) -> (i32, i32) {
    %c0_i32 = arith.constant 0 : i32
    %c0_i32_0 = arith.constant 0 : i32
    %c0_i32_1 = arith.constant 0 : i32
    return %c0_i32, %c0_i32_0 : i32, i32
  }
  func.func @transform_4(%arg0: i32) -> (i32, i32) {
    %c0_i32 = arith.constant 0 : i32
    %c0_i32_0 = arith.constant 0 : i32
    %c0_i32_1 = arith.constant 0 : i32
    return %c0_i32, %c0_i32_0 : i32, i32
  }
  func.func @transform_5(%arg0: i32) -> (i32, i32) {
    %c0_i32 = arith.constant 0 : i32
    %c0_i32_0 = arith.constant 0 : i32
    %c0_i32_1 = arith.constant 0 : i32
    return %c0_i32, %c0_i32_0 : i32, i32
  }
  func.func @transform_6(%arg0: i32) -> (i32, i32) {
    %c0_i32 = arith.constant 0 : i32
    %c0_i32_0 = arith.constant 0 : i32
    %c0_i32_1 = arith.constant 0 : i32
    return %c0_i32, %c0_i32_0 : i32, i32
  }
  func.func @transform_7(%arg0: i32) -> (i32, i32) {
    %c0_i32 = arith.constant 0 : i32
    %c0_i32_0 = arith.constant 0 : i32
    %c0_i32_1 = arith.constant 0 : i32
    return %c0_i32, %c0_i32_0 : i32, i32
  }
  func.func @transform_8(%arg0: i32) -> (i32, i32) {
    %c0_i32 = arith.constant 0 : i32
    %c0_i32_0 = arith.constant 0 : i32
    %c0_i32_1 = arith.constant 0 : i32
    return %c0_i32, %c0_i32_0 : i32, i32
  }
  func.func @transform_9(%arg0: i32) -> (i32, i32, i32) {
    %c0_i32 = arith.constant 0 : i32
    %c0_i32_0 = arith.constant 0 : i32
    %c0_i32_1 = arith.constant 0 : i32
    return %arg0, %c0_i32, %c0_i32_0 : i32, i32, i32
  }
}

</mosaic_0001>

<bundles_post_ra>
// kernel: tpu_custom_call.1
= control target key start
LH: loop header
LB: loop body
LE: loop exit
PB: predicated region body
PF: predicated region fallthrough
CT: control target
= control target key end

     0   :  { %s2754_s0 = inlined_call_operand.hbm [shape: f32[2,16,128], index: 0, kind: input, shape index: {}]   ;;  %s2755_s1 = inlined_call_operand.vmem [shape: s32[2,1,1], index: 1, kind: input, shape index: {}]   ;;  %s2756_s2 = inlined_call_operand.hbm [shape: f32[16,128], index: 2, kind: input, shape index: {}]   ;;  %s2757_s3 = inlined_call_operand.hbm [shape: f32[16,128], index: 3, kind: input, shape index: {}]   ;;  %s2758_s4 = inlined_call_operand.hbm [shape: bf16[128,256], index: 4, kind: input, shape index: {}]   ;;  %s2759_s5 = inlined_call_operand.hbm [shape: bf16[128,256], index: 5, kind: input, shape index: {}]   ;;  %s2760_s6 = inlined_call_operand.vmem [shape: f32[1,256], index: 6, kind: input, shape index: {}]   ;;  %s2761_s7 = inlined_call_operand.vmem [shape: f32[1,128], index: 7, kind: input, shape index: {}]   ;;  %s2762_s8 = inlined_call_operand.vmem [shape: f32[1,128], index: 8, kind: input, shape index: {}]   ;;  %s2763_s9 = inlined_call_operand.hbm [shape: f32[2,16,128], index: 9, kind: output, shape index: {}]  }
   0x1   :  { %2770 = sst [smem:[#allocation19_spill]] %s2763_s9 }
   0x2   :  { %14 = vsyncpa [#allocation4], 0 }
   0x3   :  { %16 = vsyncpa [#allocation4 + $0x1], 0 }
   0x4   :  { %17 = vsyncpa [#allocation7], 0 }
   0x5   :  { %18 = vsyncpa [#allocation10], 0 }
   0x6   :  { %19 = vsyncpa [#allocation5], 0 }
   0x7   :  { %21 = vsyncpa [#allocation5 + $0x1], 0  ;;  %s2316_s30 = smov 0   ;;  %s2318_s10 = smov 0  }
   0x8   :  { %s2320_s11 = smov 0   ;;  %s2322_s12 = smov 0  }
   0x9 LB: > { %2771 = sst [smem:[#allocation17_spill]] %s2224_s30  ;;  %s2337_s13 = sadd.s32 4294967295, %s2236_s12   ;;  %s2236_s12 = sphi %s2322_s12, %s2796_s12   ;;  %s2232_s11 = sphi %s2320_s11, %s2795_s11   ;;  %s2228_s10 = sphi %s2318_s10, %s2794_s10   ;;  %s2224_s30 = sphi %s2316_s30, %s2793_s30  }
   0xa   : > { %s1648_s14 = sadd.s32 4294967294, %s2236_s12   ;;  %p47_p0 = scmp.ne.s32.totalorder %s2228_s10, %s2224_s30 }
   0xb   : > { %p2764_p1 = scmp.eq.s32.totalorder %s2337_s13, 0  ;;  %p250_p3 = scmp.eq.s32.totalorder %s1648_s14, 1 }
   0xc   : > { %p1649_p5 = scmp.ge.s32.totalorder %s2236_s12, 1  ;;  %p257_p7 = scmp.lt.s32.totalorder %s2236_s12, 3 }
   0xd   : > { %p2346_p4 = por %p2764_p1, %p47_p0  ;;  %p2351_p6 = por %p250_p3, %p47_p0 }
   0xe   : > { %p2356_p8 = pnand %p1649_p5, %p257_p7  ;;  %s2254_s18 = smov [#allocation6]  }
   0xf   : > { %s2772_s15 = scalar_select %p2346_p4, 1, 0 }
  0x10   : > { %s2773_s16 = scalar_select %p2351_p6, 1, 0 }
  0x11   : > { %s2775_s17 = scalar_select %p2356_p8, 1, 0 }
  0x12   : > { %2774 = sst [smem:[#allocation18_spill]] %s2773_s16  ;;  %s269_s19 = sshll.u32 %s2254_s18, 4  ;;  %s2360_s19 = int_to_ptr.vmem [resolvable:$true] %s269_s19 }
  0x13   : > { %p1781_p9 = pneg %p2356_p8  ;;  %s2255_s21 = smov [#allocation9]  }
  0x14   : > { %s295_s22 = sshll.u32 %s2255_s21, 4  ;;  %s2256_s23 = smov [#allocation8]   ;;  %s2371_s22 = int_to_ptr.vmem [resolvable:$true] %s295_s22 }
  0x15   : > { %p2367_p11 = pnand %p1781_p9, %p2764_p1  ;;  %s2373_s24 = sshll.u32 %s2256_s23, 4  ;;  %s283_s24 = int_to_ptr.vmem [resolvable:$true] %s2373_s24 }
  0x16   : > { %s2004_s27 = scalar_lea.hbm %s2756_s2, 256 }
  0x17   : > { %p2005_p12 = scmp.ne.s32.totalorder %s2756_s2, %s2004_s27  ;;  %p2383_p13 = pneg %p2367_p11 }
  0x18   : > { %p2011_p5 = scmp.lt.u32.totalorder %s2004_s27, %s2756_s2 }
  0x19   : > { %p2007_p0 = pnand %p2383_p13, %p2005_p12 }
  0x1b   : > { %p2008_p3 = pneg %p2007_p0 }
  0x1d   : > { %p2013_p7 = pnand %p2011_p5, %p2008_p3 }
  0x1f   : > { %2016 = shalt.err (!%p2013_p7)
}
  0x20   : > { %s2017_s23 = scalar_lea.vmem %s2360_s19, 256  ;;  %p2025_p2 = scmp.lt.s32.totalorder %s2360_s19, %s2360_s19 }
  0x21   : > { %p2018_p9 = scmp.ne.s32.totalorder %s2360_s19, %s2017_s23  ;;  %p2026_p6 = scmp.lt.s32.totalorder %s2017_s23, %s2017_s23 }
  0x23   : > { %p2020_p10 = pnand %p2018_p9, %p2383_p13  ;;  %p2027_p12 = por %p2026_p6, %p2025_p2 }
  0x25   : > { %p2021_p1 = pneg %p2020_p10 }
  0x27   : > { %p2028_p0 = pnand %p2027_p12, %p2021_p1 }
  0x29   : > { %2031 = shalt.err (!%p2028_p0)
}
  0x2a   : > { %s2257_s25 = smov 128   ;;  %s2258_s26 = smov 8  }
  0x2b   : > { %1784 = dma.hbm_to_vmem [thread:$0]  (!%p2367_p11), %s2756_s2, 256, %s2360_s19, [#allocation7], %s2257_s25, %s2257_s25, %s2258_s26  }
  0x2c   : > { %s2032_s21 = scalar_lea.hbm %s2758_s4, 2048 }
  0x2d   : > { %p2033_p1 = scmp.ne.s32.totalorder %s2758_s4, %s2032_s21  ;;  %p2039_p10 = scmp.lt.u32.totalorder %s2032_s21, %s2758_s4 }
  0x2f   : > { %p2035_p2 = pnand %p2033_p1, %p2383_p13 }
  0x31   : > { %p2036_p6 = pneg %p2035_p2 }
  0x33   : > { %p2041_p3 = pnand %p2039_p10, %p2036_p6 }
  0x35   : > { %2044 = shalt.err (!%p2041_p3)
}
  0x36   : > { %s2045_s19 = scalar_lea.vmem %s2371_s22, 2048  ;;  %p2053_p12 = scmp.lt.s32.totalorder %s2371_s22, %s2371_s22 }
  0x37   : > { %p2046_p5 = scmp.ne.s32.totalorder %s2371_s22, %s2045_s19  ;;  %p2054_p0 = scmp.lt.s32.totalorder %s2045_s19, %s2045_s19 }
  0x39   : > { %p2048_p7 = pnand %p2046_p5, %p2383_p13  ;;  %p2055_p1 = por %p2054_p0, %p2053_p12 }
  0x3b   : > { %p2049_p9 = pneg %p2048_p7 }
  0x3d   : > { %p2056_p2 = pnand %p2055_p1, %p2049_p9 }
  0x3f   : > { %2059 = shalt.err (!%p2056_p2)
}
  0x40   : > { %1790 = dma.hbm_to_vmem [thread:$0]  (!%p2367_p11), %s2758_s4, 2048, %s2371_s22, [#allocation10], %s2257_s25, %s2257_s25, %s2258_s26  }
  0x41   : > { %s2060_s28 = scalar_lea.hbm %s2757_s3, 256 }
  0x42   : > { %p2061_p6 = scmp.ne.s32.totalorder %s2757_s3, %s2060_s28  ;;  %p2067_p5 = scmp.lt.u32.totalorder %s2060_s28, %s2757_s3 }
  0x44   : > { %p2063_p10 = pnand %p2061_p6, %p2383_p13 }
  0x46   : > { %p2064_p3 = pneg %p2063_p10 }
  0x48   : > { %p2069_p7 = pnand %p2067_p5, %p2064_p3 }
  0x4a   : > { %2072 = shalt.err (!%p2069_p7)
}
  0x4b   : > { %s2073_s19 = scalar_lea.vmem %s283_s24, 256  ;;  %p2081_p1 = scmp.lt.s32.totalorder %s283_s24, %s283_s24 }
  0x4c   : > { %p2074_p9 = scmp.ne.s32.totalorder %s283_s24, %s2073_s19  ;;  %p2082_p2 = scmp.lt.s32.totalorder %s2073_s19, %s2073_s19 }
  0x4e   : > { %p2076_p12 = pnand %p2074_p9, %p2383_p13  ;;  %p2083_p4 = por %p2082_p2, %p2081_p1 }
  0x50   : > { %p2077_p0 = pneg %p2076_p12 }
  0x52   : > { %p2084_p8 = pnand %p2083_p4, %p2077_p0 }
  0x54   : > { %2087 = shalt.err (!%p2084_p8)
}
  0x55   : > { %1787 = dma.hbm_to_vmem [thread:$0]  (!%p2367_p11), %s2757_s3, 256, %s283_s24, [#allocation7], %s2257_s25, %s2257_s25, %s2258_s26  }
  0x56   : > { %s2259_s30 = smov [#allocation11]   ;;  %s2088_s29 = scalar_lea.hbm %s2759_s5, 2048 }
  0x57   : > { %s308_s16 = sshll.u32 %s2259_s30, 4  ;;  %p2089_p4 = scmp.ne.s32.totalorder %s2759_s5, %s2088_s29  ;;  %s309_s16 = int_to_ptr.vmem [resolvable:$true] %s308_s16 }
  0x58   : > { %p2095_p10 = scmp.lt.u32.totalorder %s2088_s29, %s2759_s5 }
  0x59   : > { %p2091_p8 = pnand %p2089_p4, %p2383_p13 }
  0x5b   : > { %p2092_p6 = pneg %p2091_p8 }
  0x5d   : > { %p2097_p3 = pnand %p2095_p10, %p2092_p6 }
  0x5f   : > { %2100 = shalt.err (!%p2097_p3)
}
  0x60   : > { %s2101_s24 = scalar_lea.vmem %s309_s16, 2048  ;;  %p2109_p12 = scmp.lt.s32.totalorder %s309_s16, %s309_s16 }
  0x61   : > { %p2102_p5 = scmp.ne.s32.totalorder %s309_s16, %s2101_s24  ;;  %p2110_p0 = scmp.lt.s32.totalorder %s2101_s24, %s2101_s24 }
  0x63   : > { %p2104_p7 = pnand %p2102_p5, %p2383_p13  ;;  %p2111_p1 = por %p2110_p0, %p2109_p12 }
  0x65   : > { %p2105_p9 = pneg %p2104_p7 }
  0x67   : > { %p2112_p2 = pnand %p2111_p1, %p2105_p9 }
  0x69   : > { %2115 = shalt.err (!%p2112_p2)
}
  0x6a   : > { %1793 = dma.hbm_to_vmem [thread:$0]  (!%p2367_p11), %s2759_s5, 2048, %s309_s16, [#allocation10], %s2257_s25, %s2257_s25, %s2258_s26  }
  0x6b   : > { %s2477_s14 = sadd.s32 1, %s2236_s12   ;;  %s34_s20 = sadd.s32 1, %s2232_s11 }
  0x6c   : > { %s31_s30 = ssub.s32 %s2236_s12, %s2477_s14  ;;  %p41_p13 = scmp.ne.s32.totalorder %s2232_s11, %s2228_s10 }
  0x6d   : > { %p32_p4 = scmp.eq.s32.totalorder %s31_s30, 0  ;;  %p42_p8 = scmp.eq.s32.totalorder %s2236_s12, 0 }
  0x6e   : > { %p2778_p6 = scmp.eq.s32.totalorder %s2337_s13, 1  ;;  %p1806_p3 = scmp.lt.s32.totalorder %s2236_s12, 2 }
  0x6f   : > { %s2493_s28 = scalar_select %p32_p4, %s2232_s11, %s34_s20  }
  0x70   : > { %p2487_p10 = por %p2778_p6, %p41_p13  ;;  %p43_p5 = por %p42_p8, %p41_p13 }
  0x71   : > { %s331_s29 = sand.u32 1, %s2232_s11   ;;  %s1759_s16 = sshll.u32 %s2236_s12, 8 }
  0x72   : > { %s1655_s18 = sshll.u32 %s331_s29, 4  ;;  %s2500_s19 = scalar_lea.hbm %s2754_s0, %s1759_s16 }
  0x73   : > { %s335_s24 = scalar_lea.vmem [#allocation3], %s1655_s18  ;;  %p2504_p11 = pnand %p1806_p3, %p43_p5 }
  0x74   : > { %s342_s22 = sshll.u32 %s335_s24, 4  ;;  %s2508_s20 = scalar_lea.sflag [#allocation4], %s331_s29  ;;  %s2502_s22 = int_to_ptr.vmem [resolvable:$true] %s342_s22 }
  0x75   : > { %s2116_s30 = scalar_lea.hbm %s2500_s19, 256  ;;  %p2118_p9 = pneg %p2504_p11 }
  0x76   : > { %p2117_p7 = scmp.ne.s32.totalorder %s2500_s19, %s2116_s30  ;;  %s2121_s21 = scalar_lea.hbm %s2754_s0, 512 }
  0x77   : > { %p2122_p1 = scmp.lt.u32.totalorder %s2500_s19, %s2754_s0  ;;  %p2123_p2 = scmp.lt.u32.totalorder %s2121_s21, %s2116_s30 }
  0x78   : > { %p2119_p12 = pnand %p2118_p9, %p2117_p7  ;;  %p2125_p4 = scmp.lt.u32.totalorder %s2116_s30, %s2500_s19 }
  0x79   : > { %p2124_p13 = por %p2123_p2, %p2122_p1 }
  0x7a   : > { %p2120_p0 = pneg %p2119_p12 }
  0x7b   : > { %p2126_p8 = por %p2125_p4, %p2124_p13 }
  0x7d   : > { %p2127_p6 = pnand %p2126_p8, %p2120_p0 }
  0x7f   : > { %2130 = shalt.err (!%p2127_p6)
}
  0x80   : > { %s2131_s29 = scalar_lea.vmem %s2502_s22, 256  ;;  %s2260_s18 = smov [#allocation3]  }
  0x81   : > { %p2132_p3 = scmp.ne.s32.totalorder %s2502_s22, %s2131_s29  ;;  %s2136_s16 = sshll.u32 %s2260_s18, 4  ;;  %s2137_s16 = int_to_ptr.vmem [resolvable:$false] %s2136_s16 }
  0x82   : > { %s2138_s23 = scalar_lea.vmem %s2137_s16, 512  ;;  %p2139_p12 = scmp.lt.s32.totalorder %s2502_s22, %s2137_s16 }
  0x83   : > { %p2134_p5 = pnand %p2132_p3, %p2118_p9  ;;  %p2140_p1 = scmp.lt.s32.totalorder %s2138_s23, %s2131_s29 }
  0x85   : > { %p2135_p7 = pneg %p2134_p5  ;;  %p2141_p2 = por %p2140_p1, %p2139_p12 }
  0x87   : > { %p2142_p13 = pnand %p2141_p2, %p2135_p7 }
  0x89   : > { %2145 = shalt.err (!%p2142_p13)
}
  0x8a   : > { %1797 = dma.hbm_to_vmem [thread:$0]  (!%p2504_p11), %s2500_s19, 256, %s2502_s22, %s2508_s20, %s2257_s25, %s2257_s25, %s2258_s26  }
  0x8b   : > { %p2781_p9 = scmp.ne.s32.totalorder %s2775_s17, 0 }
  0x8c   : > { %s2542_s30 = sand.u32 (!%p2781_p9), 1, %s2228_s10   ;;  %p2782_p0 = scmp.ne.s32.totalorder (!%p2781_p9), %s2772_s15, 0 }
  0x8d   : > { %360 = sbr.rel (%p2781_p9) target bundleno = 981 (0x3d5), region = 56  ;;  %s1659_s21 = sshll.u32 (!%p2781_p9), %s2542_s30, 4 }
  0x8e   : > { %s363_s24 = scalar_lea.sflag (!%p2781_p9), [#allocation4], %s2542_s30  ;;  %s2548_s9 = scalar_lea.vmem (!%p2781_p9), [#allocation3], %s1659_s21 }
  0x94   : > { %2207 = dma.done.wait (%p2782_p0), %s363_s24, 256  }
  0x95   : > { %2209 = vsyncadd (%p2782_p0), %s363_s24, 4294967040  ;;  %p2783_p11 = scmp.eq.s32.totalorder %s2337_s13, 0 }
  0x97   : > { %2211 = dma.done.wait (%p2783_p11), [#allocation7], 512   ;;  %p2784_p4 = pmov %p2783_p11 }
  0x99   : > { %2213 = vsyncadd (%p2784_p4), [#allocation7], 4294966784  ;;  %p2785_p8 = pmov %p2784_p4 }
  0x9a   : > { %p2786_p6 = pmov %p2784_p4 }
  0x9b   : > { %2215 = dma.done.wait (%p2785_p8), [#allocation10], 4096  }
  0x9c   : > { %2217 = vsyncadd (%p2786_p6), [#allocation10], 4294963200  ;;  %v2261_v0 = vmov 0   ;;  %v2262_v1 = vmov 0.0   ;;  %v426_v2 = vld [vmem:[%s2548_s9] sm:$0xff]  ;;  %v427_v3 = vld [vmem:[%s2548_s9 + $0x8] sm:$0xff]  ;;  %v470_v6 = vlaneseq }
  0x9d   : > { %1886 = vset.pattern.permute.xlu0 %v2261_v0  ;;  %496 = vst [vmem:[#allocation2] sm:$0xff] %v2262_v1  ;;  %499 = vst [vmem:[#allocation2 + $0x18] sm:$0xff] %v2262_v1  ;;  %1887 = vset.pattern.permute.xlu1 %v2261_v0  ;;  %v434_v4 = vmul.f32 %v426_v2, %v426_v2  ;;  %v435_v5 = vmul.f32 %v427_v3, %v427_v3  ;;  %p420_p3 = scmp.lt.s32.totalorder %s2337_s13, 1  ;;  %v1665_v29 = vld [vmem:[%s2761_s7] ss:$0 sm:$0xff]  ;;  %s2617_s18 = scalar_lea.vmem [#allocation12], %s1659_s21 }
  0x9e   : > { %428 = vadd.xlane.f32.xlu0 %v426_v2  ;;  %430 = vadd.xlane.f32.xlu1 %v427_v3  ;;  %v2568_v7 = vshrl.u32 %v470_v6, 7  ;;  %v1666_v32 = vld [vmem:[%s2762_s8] ss:$0 sm:$0xff]  ;;  %s2619_s16 = smov 0  }
  0x9f   : > { %s421_s15 = scalar_select %p420_p3, %s2337_s13, 1  ;;  %v500_v44 = vld [vmem:[#allocation6] sm:$0xff] }
  0xa0   : > { %v472_v8 = vadd.s32 8, %v2568_v7  ;;  %v2582_v42 = vsub.s32 0, %v2568_v7  ;;  %v2585_v43 = vsub.s32 1, %v2568_v7  ;;  %v2588_v45 = vsub.s32 2, %v2568_v7 }
  0xa1   : > { %s422_s26 = scalar_lea.vmem %s2755_s1, %s421_s15  ;;  %v2593_v48 = vsub.s32 3, %v2568_v7  ;;  %v2597_v50 = vsub.s32 4, %v2568_v7  ;;  %v2601_v54 = vsub.s32 5, %v2568_v7  ;;  %v2605_v59 = vsub.s32 6, %v2568_v7 }
  0xa2   : > { %436 = vadd.xlane.f32.xlu0 %v434_v4  ;;  %438 = vadd.xlane.f32.xlu1 %v435_v5  ;;  %v1667_v9 = vld [vmem:[%s422_s26] ss:$0 sm:$0xff]  ;;  %v507_v46 = vrot.slane %v500_v44, %v2582_v42  ;;  %v516_v47 = vrot.slane %v500_v44, %v2585_v43  ;;  %v525_v49 = vrot.slane %v500_v44, %v2588_v45 }
  0xa3   : > { %vm479_vm0 = vcmp.lt.s32.totalorder %v472_v8, %v1667_v9  ;;  %vm478_vm1 = vcmp.lt.s32.totalorder %v2568_v7, %v1667_v9  ;;  %v534_v53 = vrot.slane %v500_v44, %v2593_v48  ;;  %v543_v58 = vrot.slane %v500_v44, %v2597_v50 }
  0xa4   : > { %v1669_v10 = vsel %vm479_vm0, 1.0, %v2262_v1  ;;  %v1668_v11 = vsel %vm478_vm1, 1.0, %v2262_v1  ;;  %v552_v63 = vrot.slane %v500_v44, %v2601_v54  ;;  %v2609_v1 = vsub.s32 7, %v2568_v7 }
  0xa5   : > { %v561_v5 = vrot.slane %v500_v44, %v2605_v59 }
  0xb3   : > { %491 = vperm.xlu1 %1887, %v1669_v10   ;;  %v570_v10 = vrot.slane %v500_v44, %v2609_v1 }
  0xb8   : > { %486 = vperm.xlu0 %1886, %v1668_v11  }
 0x12b   : > { %v429_v12 = vpop.xlane.xlu0 %428  ;;  %v431_v13 = vpop.xlane.xlu1 %430 }
 0x12c   : > { %v432_v14 = vmul.f32 0.03125, %v429_v12  ;;  %v433_v15 = vmul.f32 0.03125, %v431_v13 }
 0x12e   : > { %v443_v16 = vmul.f32 %v433_v15, %v433_v15  ;;  %v442_v19 = vmul.f32 %v432_v14, %v432_v14  ;;  %v447_v26 = vsub.f32 %v427_v3, %v433_v15  ;;  %v446_v27 = vsub.f32 %v426_v2, %v432_v14 }
 0x12f   : > { %v437_v17 = vpop.xlane.xlu0 %436  ;;  %v439_v18 = vpop.xlane.xlu1 %438 }
 0x130   : > { %v440_v20 = vmul.f32 0.03125, %v437_v17  ;;  %v441_v21 = vmul.f32 0.03125, %v439_v18  ;;  %v2238_v18 = vmov 0.0  }
 0x132   : > { %v444_v22 = vsub.f32 %v440_v20, %v442_v19  ;;  %v445_v23 = vsub.f32 %v441_v21, %v443_v16 }
 0x133   : > { %v492_v38 = vpop.permute.xlu1 %491 }
 0x134   : > { %v448_v24 = vadd.f32 1e-05, %v444_v22  ;;  %v449_v25 = vadd.f32 1e-05, %v445_v23 }
 0x136   : > { %1888 = vrsqrt.f32 %v448_v24 }
 0x137   : > { %1890 = vrsqrt.f32 %v449_v25  ;;  %v487_v35 = vpop.permute.xlu0 %486 }
 0x140   : > { %v1889_v28 = vpop.eup %1888 }
 0x141   : > { %v1891_v30 = vpop.eup %1890  ;;  %v452_v31 = vmul.f32 %v1889_v28, %v446_v27 }
 0x142   : > { %v453_v33 = vmul.f32 %v1891_v30, %v447_v26 }
 0x143   : > { %v460_v34 = vmul.f32 %v1665_v29, %v452_v31 }
 0x144   : > { %v461_v36 = vmul.f32 %v1665_v29, %v453_v33 }
 0x145   : > { %v468_v37 = vadd.f32 %v1666_v32, %v460_v34 }
 0x146   : > { %v469_v39 = vadd.f32 %v1666_v32, %v461_v36 }
 0x147   : > { %v494_v40 = vmul.f32 %v487_v35, %v468_v37 }
 0x148   : > { %v495_v41 = vmul.f32 %v492_v38, %v469_v39 }
 0x149   : > { %497 = vst [vmem:[#allocation2 + $0x8] sm:$0xff] %v494_v40  ;;  %v508_v55 = vmul.f32 %v507_v46, %v494_v40 }
 0x14a   : > { %498 = vst [vmem:[#allocation2 + $0x10] sm:$0xff] %v495_v41 }
 0x150   : > { %v512_v51 = vld [vmem:[#allocation2 + $0x7] sm:$0xff] }
 0x151   : > { %v521_v52 = vld [vmem:[#allocation2 + $0x6] sm:$0xff]  ;;  %v517_v56 = vmul.f32 %v516_v47, %v512_v51 }
 0x152   : > { %v530_v57 = vld [vmem:[#allocation2 + $0x5] sm:$0xff]  ;;  %v526_v61 = vmul.f32 %v525_v49, %v521_v52 }
 0x153   : > { %v518_v60 = vadd.f32 %v517_v56, %v508_v55  ;;  %v539_v62 = vld [vmem:[#allocation2 + $0x4] sm:$0xff]  ;;  %v535_v3 = vmul.f32 %v534_v53, %v530_v57 }
 0x154   : > { %v548_v4 = vld [vmem:[#allocation2 + $0x3] sm:$0xff]  ;;  %v544_v8 = vmul.f32 %v543_v58, %v539_v62 }
 0x155   : > { %v527_v2 = vadd.f32 %v526_v61, %v518_v60  ;;  %v557_v9 = vld [vmem:[#allocation2 + $0x2] sm:$0xff]  ;;  %v553_v12 = vmul.f32 %v552_v63, %v548_v4 }
 0x156   : > { %v566_v13 = vld [vmem:[#allocation2 + $0x1] sm:$0xff]  ;;  %v562_v15 = vmul.f32 %v561_v5, %v557_v9 }
 0x157   : > { %v536_v6 = vadd.f32 %v535_v3, %v527_v2  ;;  %v571_v17 = vmul.f32 %v570_v10, %v566_v13 }
 0x159   : > { %v545_v11 = vadd.f32 %v544_v8, %v536_v6 }
 0x15b   : > { %v554_v14 = vadd.f32 %v553_v12, %v545_v11 }
 0x15d   : > { %v563_v16 = vadd.f32 %v562_v15, %v554_v14 }
 0x15f   : > { %v2613_v7 = vadd.f32 %v571_v17, %v563_v16 }
 0x160 LB: >> { %s1670_s23 = sshll.u32 %s2244_s16, 3  ;;  %s578_s16 = sadd.s32 1, %s2244_s16   ;;  %s2244_s16 = sphi %s2619_s16, %s578_s16   ;;  %v2240_v18 = vphi %v2238_v18, %v2239_v18  }
 0x161   : >> { %s581_s24 = scalar_lea.vmem [#allocation8], %s1670_s23  ;;  %s1517_s15 = scalar_lea.vmem [#allocation2], %s1670_s23 }
 0x162   : >> { %v582_v19 = vld [vmem:[%s581_s24] sm:$0xff]  ;;  %v1672_v20 = vld [vmem:[%s1517_s15 + $0x8] sm:$0xff]  ;;  %p575_p5 = scmp.ge.s32.totalorder %s578_s16, 2  }
 0x163   : >> { %v1674_v21 = vld [vmem:[%s1517_s15 + $0x9] sm:$0xff]  ;;  %v589_v22 = vrot.slane %v582_v19, %v2582_v42  ;;  %v598_v23 = vrot.slane %v582_v19, %v2585_v43  ;;  %v607_v24 = vrot.slane %v582_v19, %v2588_v45  ;;  %v616_v28 = vrot.slane %v582_v19, %v2593_v48  ;;  %819 = vmatprep.mubr.bf16.mxu0 (%p575_p5), %v2261_v0  ;;  %v1898_v2 = vld [vmem:[#allocation11 + $0x14] ss:$8 sps:$4 sm:$0xff] (%p575_p5)   ;;  %s2658_s25 = smov (%p575_p5), 0  }
 0x164   : >> { %v1676_v25 = vld [vmem:[%s1517_s15 + $0xa] sm:$0xff]  ;;  %v625_v32 = vrot.slane %v582_v19, %v2597_v50  ;;  %v634_v36 = vrot.slane %v582_v19, %v2601_v54  ;;  %v643_v40 = vrot.slane %v582_v19, %v2605_v59  ;;  %v652_v47 = vrot.slane %v582_v19, %v2609_v1  ;;  %940 = vmatprep.mubr.bf16.mxu1 (%p575_p5), %v2261_v0  ;;  %v1900_v5 = vld [vmem:[#allocation9 + $0x14] ss:$8 sps:$4 sm:$0xff] (%p575_p5)  }
 0x165   : >> { %v590_v26 = vmul.f32 %v1672_v20, %v589_v22  ;;  %v599_v27 = vmul.f32 %v1674_v21, %v598_v23  ;;  %v1678_v29 = vld [vmem:[%s1517_s15 + $0xb] sm:$0xff]  ;;  %v608_v31 = vmul.f32 %v1676_v25, %v607_v24  ;;  %v656_v4 = vmul.f32 (%p575_p5), 0.044715, %v2613_v7  ;;  %v1910_v17 = vld [vmem:[#allocation11 + $0x34] ss:$8 sps:$4 sm:$0xff] (%p575_p5)  }
 0x166   : >> { %v1680_v33 = vld [vmem:[%s1517_s15 + $0xc] sm:$0xff]  ;;  %v617_v35 = vmul.f32 %v1678_v29, %v616_v28  ;;  %v1896_v62 = vld [vmem:[#allocation11] ss:$8 sps:$4 sm:$0xff] (%p575_p5)   ;;  %v1922_v28 = vld [vmem:[#allocation11 + $0x54] ss:$8 sps:$4 sm:$0xff] (%p575_p5)  }
 0x167   : >> { %v591_v30 = vadd.f32 %v2240_v18, %v590_v26  ;;  %v1682_v37 = vld [vmem:[%s1517_s15 + $0xd] sm:$0xff]  ;;  %v626_v39 = vmul.f32 %v1680_v33, %v625_v32  ;;  %v1897_v63 = vld [vmem:[#allocation9] ss:$8 sps:$4 sm:$0xff] (%p575_p5)   ;;  %v657_v10 = vmul.f32 (%p575_p5), %v656_v4, %v2613_v7 }
 0x168   : >> { %v1684_v41 = vld [vmem:[%s1517_s15 + $0xe] sm:$0xff]  ;;  %v635_v46 = vmul.f32 %v1682_v37, %v634_v36  ;;  %v1908_v13 = vld [vmem:[#allocation11 + $0x20] ss:$8 sps:$4 sm:$0xff] (%p575_p5)  }
 0x169   : >> { %v600_v34 = vadd.f32 %v599_v27, %v591_v30  ;;  %v1686_v49 = vld [vmem:[%s1517_s15 + $0xf] sm:$0xff]  ;;  %v644_v52 = vmul.f32 %v1684_v41, %v643_v40  ;;  %v1909_v14 = vld [vmem:[#allocation9 + $0x20] ss:$8 sps:$4 sm:$0xff] (%p575_p5)   ;;  %v658_v16 = vmul.f32 (%p575_p5), %v657_v10, %v2613_v7 }
 0x16a   : >> { %v653_v55 = vmul.f32 %v1686_v49, %v652_v47  ;;  %v1892_v58 = vld [vmem:[#allocation11 + $0x4] ss:$8 sps:$4 sm:$0xff] (%p575_p5)   ;;  %v1902_v6 = vld [vmem:[#allocation11 + $0x10] ss:$8 sps:$4 sm:$0xff] (%p575_p5)   ;;  %v1920_v26 = vld [vmem:[#allocation11 + $0x40] ss:$8 sps:$4 sm:$0xff] (%p575_p5)  }
 0x16b   : >> { %v609_v38 = vadd.f32 %v608_v31, %v600_v34  ;;  %v1894_v60 = vld [vmem:[#allocation9 + $0x4] ss:$8 sps:$4 sm:$0xff] (%p575_p5)   ;;  %787 = vmatprep.subr.bf16.mxu0 (%p575_p5), %v1892_v58  ;;  %v1903_v8 = vld [vmem:[#allocation9 + $0x10] ss:$8 sps:$4 sm:$0xff] (%p575_p5)   ;;  %v659_v20 = vadd.f32 (%p575_p5), %v658_v16, %v2613_v7  ;;  %v1921_v27 = vld [vmem:[#allocation9 + $0x40] ss:$8 sps:$4 sm:$0xff] (%p575_p5)  }
 0x16c   : > { %908 = vmatprep.subr.bf16.mxu1 (%p575_p5), %v1894_v60  ;;  %788 = vmatpush1.bf16.msra.mxu0 (%p575_p5), %v1896_v62  ;;  %v1904_v11 = vld [vmem:[#allocation11 + $0x24] ss:$8 sps:$4 sm:$0xff] (%p575_p5)   ;;  %v1914_v21 = vld [vmem:[#allocation11 + $0x30] ss:$8 sps:$4 sm:$0xff] (%p575_p5)   ;;  %v1924_v29 = vld [vmem:[#allocation9 + $0x54] ss:$8 sps:$4 sm:$0xff] (%p575_p5)  }
 0x16d   : >> { %v618_v44 = vadd.f32 %v617_v35, %v609_v38  ;;  %909 = vmatpush1.bf16.msra.mxu1 (%p575_p5), %v1897_v63  ;;  %789 = vmatprep.subr.bf16.mxu0 (%p575_p5), %v1898_v2  ;;  %v1906_v12 = vld [vmem:[#allocation9 + $0x24] ss:$8 sps:$4 sm:$0xff] (%p575_p5)   ;;  %v660_v22 = vmul.f32 (%p575_p5), 0.7978846, %v659_v20  ;;  %v1915_v23 = vld [vmem:[#allocation9 + $0x30] ss:$8 sps:$4 sm:$0xff] (%p575_p5)  }
 0x16e   : > { %910 = vmatprep.subr.bf16.mxu1 (%p575_p5), %v1900_v5  ;;  %v1916_v24 = vld [vmem:[#allocation11 + $0x44] ss:$8 sps:$4 sm:$0xff] (%p575_p5)   ;;  %v1926_v30 = vld [vmem:[#allocation11 + $0x50] ss:$8 sps:$4 sm:$0xff] (%p575_p5)   ;;  %v655_v38 = vmul.f32 (%p575_p5), 0.5, %v2613_v7 }
 0x16f   : >> { %v627_v51 = vadd.f32 %v626_v39, %v618_v44  ;;  %v1918_v25 = vld [vmem:[#allocation9 + $0x44] ss:$8 sps:$4 sm:$0xff] (%p575_p5)   ;;  %v1927_v31 = vld [vmem:[#allocation9 + $0x50] ss:$8 sps:$4 sm:$0xff] (%p575_p5)   ;;  %v1932_v39 = vld [vmem:[#allocation11 + $0x60] ss:$8 sps:$4 sm:$0xff] (%p575_p5)  }
 0x170   : > { %790 = vmatpush1.bf16.msra.mxu0 (%p575_p5), %v1902_v6  ;;  %v1928_v33 = vld [vmem:[#allocation11 + $0x64] ss:$8 sps:$4 sm:$0xff] (%p575_p5)   ;;  %v1933_v40 = vld [vmem:[#allocation9 + $0x60] ss:$8 sps:$4 sm:$0xff] (%p575_p5)   ;;  %v1934_v44 = vld [vmem:[#allocation11 + $0x74] ss:$8 sps:$4 sm:$0xff] (%p575_p5)  }
 0x171   : >> { %v636_v53 = vadd.f32 %v635_v46, %v627_v51  ;;  %911 = vmatpush1.bf16.msra.mxu1 (%p575_p5), %v1903_v8  ;;  %791 = vmatprep.subr.bf16.mxu0 (%p575_p5), %v1904_v11  ;;  %v1930_v34 = vld [vmem:[#allocation9 + $0x64] ss:$8 sps:$4 sm:$0xff] (%p575_p5)   ;;  %v1936_v46 = vld [vmem:[#allocation9 + $0x74] ss:$8 sps:$4 sm:$0xff] (%p575_p5)   ;;  %v1938_v51 = vld [vmem:[#allocation11 + $0x70] ss:$8 sps:$4 sm:$0xff] (%p575_p5)  }
 0x172   : > { %577 = sbr.rel (!%p575_p5) target bundleno = 352 (0x160), region = 168  ;;  %912 = vmatprep.subr.bf16.mxu1 (%p575_p5), %v1906_v12  ;;  %v949_v7 = vld [vmem:[%s2760_s6] sm:$0x3] (%p575_p5) }
 0x173   : >> { %v645_v56 = vadd.f32 %v644_v52, %v636_v53  ;;  %v1939_v52 = vld [vmem:[#allocation9 + $0x70] ss:$8 sps:$4 sm:$0xff] (%p575_p5)   ;;  %v958_v58 = vrot.slane (%p575_p5), %v949_v7, %v2585_v43  ;;  %v954_v11 = vrot.slane (%p575_p5), %v949_v7, %v2582_v42 }
 0x174   : > { %792 = vmatpush1.bf16.msra.mxu0 (%p575_p5), %v1908_v13 }
 0x175   : >> { %v2633_v18 = vadd.f32 %v653_v55, %v645_v56   ;;  %913 = vmatpush1.bf16.msra.mxu1 (%p575_p5), %v1909_v14  ;;  %793 = vmatprep.subr.bf16.mxu0 (%p575_p5), %v1910_v17  ;;  %v970_v14 = vld [vmem:[%s2548_s9] sm:$0xff] (%p575_p5)  ;;  %v2246_v17 = vmov (%p575_p5), 0.0  }
 0x177   : >> { %v2787_v57 = vmov %v2633_v18 }
 0x178   : >> { %v2239_v18 = vmov %v2787_v57   ;;  %v666_v61 = vmul.f32 (%p575_p5), 0.044715, %v2787_v57  ;;  %794 = vmatpush1.bf16.msra.mxu0 (%p575_p5), %v1914_v21  ;;  %v665_v36 = vmul.f32 (%p575_p5), 0.5, %v2787_v57 }
 0x179   : > { %v1912_v18 = vld [vmem:[#allocation9 + $0x34] ss:$8 sps:$4 sm:$0xff]   ;;  %795 = vmatprep.subr.bf16.mxu0 %v1916_v24 }
 0x17a   : > { %v667_v3 = vmul.f32 %v666_v61, %v2787_v57  ;;  %914 = vmatprep.subr.bf16.mxu1 %v1912_v18 }
 0x17b   : > { %915 = vmatpush1.bf16.msra.mxu1 %v1915_v23 }
 0x17c   : > { %v668_v9 = vmul.f32 %v667_v3, %v2787_v57  ;;  %916 = vmatprep.subr.bf16.mxu1 %v1918_v25  ;;  %796 = vmatpush1.bf16.msra.mxu0 %v1920_v26 }
 0x17d   : > { %797 = vmatprep.subr.bf16.mxu0 %v1922_v28 }
 0x17e   : > { %v669_v15 = vadd.f32 %v668_v9, %v2787_v57 }
 0x17f   : > { %917 = vmatpush1.bf16.msra.mxu1 %v1921_v27 }
 0x180   : > { %v670_v19 = vmul.f32 0.7978846, %v669_v15  ;;  %918 = vmatprep.subr.bf16.mxu1 %v1924_v29  ;;  %798 = vmatpush1.bf16.msra.mxu0 %v1926_v30 }
 0x181   : > { %799 = vmatprep.subr.bf16.mxu0 %v1928_v33 }
 0x182   : > { %1940 = vtanh.f32 %v670_v19 }
 0x183   : > { %1942 = vtanh.f32 %v660_v22  ;;  %919 = vmatpush1.bf16.msra.mxu1 %v1927_v31 }
 0x184   : > { %920 = vmatprep.subr.bf16.mxu1 %v1930_v34  ;;  %800 = vmatpush1.bf16.msra.mxu0 %v1932_v39 }
 0x185   : > { %801 = vmatprep.subr.bf16.mxu0 %v1934_v44 }
 0x187   : > { %921 = vmatpush1.bf16.msra.mxu1 %v1933_v40 }
 0x188   : > { %922 = vmatprep.subr.bf16.mxu1 %v1936_v46  ;;  %802 = vmatpush1.bf16.msra.mxu0 %v1938_v51 }
 0x18b   : > { %923 = vmatpush1.bf16.msra.mxu1 %v1939_v52 }
 0x18c   : > { %v1941_v32 = vpop.eup %1940 }
 0x18d   : > { %v1943_v35 = vpop.eup %1942  ;;  %v672_v37 = vadd.f32 1.0, %v1941_v32 }
 0x18e   : > { %v662_v41 = vadd.f32 1.0, %v1943_v35 }
 0x18f   : > { %v673_v47 = vmul.f32 %v672_v37, %v665_v36 }
 0x190   : > { %v663_v49 = vmul.f32 %v662_v41, %v655_v38 }
 0x191   : > { %v674_v53 = vpack.c.bf16 %v673_v47, %v673_v47 }
 0x192   : > { %v664_v55 = vpack.c.bf16 %v663_v49, %v663_v49 }
 0x193   : > { %820 = vmatmul.mubr.bf16.vlgmr.msra.gmra.mrb[0].mxu0 %v674_v53 }
 0x194   : > { %941 = vmatmul.mubr.bf16.vlgmr.msra.gmra.mrb[0].mxu1 %v664_v55 }
 0x266   : > { %v821_v56 = vpop.f32.mrb[0].mxu0 }
 0x267   : > { %v942_v57 = vpop.f32.mrb[0].mxu1  ;;  %v823_v61 = vpop.f32.mrb[1].mxu0 }
 0x268   : > { %v943_v60 = vadd.f32 %v942_v57, %v821_v56  ;;  %v944_v62 = vpop.f32.mrb[1].mxu1  ;;  %v825_v2 = vpop.f32.mrb[2].mxu0 }
 0x269   : > { %v945_v63 = vadd.f32 %v944_v62, %v823_v61  ;;  %v946_v3 = vpop.f32.mrb[2].mxu1  ;;  %v826_v4 = vpop.f32.mrb[3].mxu0 }
 0x26a   : > { %v947_v5 = vpop.f32.mrb[3].mxu1  ;;  %v961_v12 = vadd.f32 %v954_v11, %v943_v60 }
 0x26b   : > { %v962_v6 = vadd.f32 %v958_v58, %v945_v63 }
 0x26d   : > { %v1719_v8 = vmul.f32 -1.442695, %v962_v6 }
 0x26f   : > { %1944 = vpow2.f32 %v1719_v8 }
 0x279   : > { %v1945_v9 = vpop.eup %1944 }
 0x27a   : > { %v966_v10 = vadd.f32 1.0, %v1945_v9 }
 0x27c   : > { %1946 = vrcp.f32 %v966_v10 }
 0x286   : > { %v1947_v13 = vpop.eup %1946 }
 0x287   : > { %v969_v15 = vmul.f32 %v1947_v13, %v961_v12 }
 0x289   : > { %v971_v16 = vadd.f32 %v970_v14, %v969_v15 }
 0x28b   : > { %972 = vst [vmem:[%s2617_s18] sm:$0xff] %v971_v16 }
 0x28c LB: >> { %s2664_s26 = sshll.u32 %s2252_s25, 3  ;;  %s978_s25 = sadd.s32 1, %s2252_s25   ;;  %s2252_s25 = sphi %s2658_s25, %s978_s25   ;;  %v2248_v17 = vphi %v2246_v17, %v2247_v17  }
 0x28d   : >> { %s983_s19 = ssub.s32 16, %s2664_s26  ;;  %s981_s22 = scalar_lea.vmem [#allocation6], %s2664_s26 }
 0x28e   : >> { %v982_v18 = vld [vmem:[%s981_s22] sm:$0xff]  ;;  %s992_s20 = ssub.s32 15, %s2664_s26  ;;  %s984_s29 = scalar_lea.vmem [#allocation2], %s983_s19 }
 0x28f   : >> { %v985_v19 = vld [vmem:[%s984_s29] sm:$0xff]  ;;  %v989_v20 = vrot.slane %v982_v18, %v2582_v42  ;;  %v998_v21 = vrot.slane %v982_v18, %v2585_v43  ;;  %s1001_s16 = ssub.s32 14, %s2664_s26  ;;  %v1007_v22 = vrot.slane %v982_v18, %v2588_v45  ;;  %s993_s23 = scalar_lea.vmem [#allocation2], %s992_s20  ;;  %v1016_v27 = vrot.slane %v982_v18, %v2593_v48 }
 0x290   : >> { %v994_v23 = vld [vmem:[%s993_s23] sm:$0xff]  ;;  %s1010_s24 = ssub.s32 13, %s2664_s26  ;;  %s1002_s15 = scalar_lea.vmem [#allocation2], %s1001_s16  ;;  %v1025_v31 = vrot.slane %v982_v18, %v2597_v50  ;;  %v1034_v35 = vrot.slane %v982_v18, %v2601_v54  ;;  %v1043_v39 = vrot.slane %v982_v18, %v2605_v59  ;;  %v1052_v46 = vrot.slane %v982_v18, %v2609_v1 }
 0x291   : >> { %v990_v24 = vmul.f32 %v989_v20, %v985_v19  ;;  %v999_v25 = vmul.f32 %v998_v21, %v994_v23  ;;  %v1003_v26 = vld [vmem:[%s1002_s15] sm:$0xff]  ;;  %s1019_s21 = ssub.s32 12, %s2664_s26  ;;  %s1011_s17 = scalar_lea.vmem [#allocation2], %s1010_s24 }
 0x292   : >> { %v1012_v28 = vld [vmem:[%s1011_s17] sm:$0xff]  ;;  %s1028_s19 = ssub.s32 11, %s2664_s26  ;;  %v1008_v30 = vmul.f32 %v1007_v22, %v1003_v26  ;;  %s1037_s22 = ssub.s32 10, %s2664_s26 }
 0x293   : >> { %v991_v29 = vadd.f32 %v2248_v17, %v990_v24  ;;  %s1020_s29 = scalar_lea.vmem [#allocation2], %s1019_s21  ;;  %s1046_s20 = ssub.s32 9, %s2664_s26  ;;  %v1017_v34 = vmul.f32 %v1016_v27, %v1012_v28 }
 0x294   : >> { %v1021_v32 = vld [vmem:[%s1020_s29] sm:$0xff]  ;;  %s1029_s16 = scalar_lea.vmem [#allocation2], %s1028_s19  ;;  %s1038_s23 = scalar_lea.vmem [#allocation2], %s1037_s22 }
 0x295   : >> { %v1000_v33 = vadd.f32 %v999_v25, %v991_v29  ;;  %v1030_v36 = vld [vmem:[%s1029_s16] sm:$0xff]  ;;  %v1026_v38 = vmul.f32 %v1025_v31, %v1021_v32  ;;  %s1047_s24 = scalar_lea.vmem [#allocation2], %s1046_s20  ;;  %p975_p7 = scmp.ge.s32.totalorder %s978_s25, 2  }
 0x296   : >> { %v1039_v40 = vld [vmem:[%s1038_s23] sm:$0xff]  ;;  %v1035_v44 = vmul.f32 %v1034_v35, %v1030_v36  ;;  %1413 = vmatprep.mubr.bf16.mxu1 (%p975_p7), %v2261_v0  ;;  %1292 = vmatprep.mubr.bf16.mxu0 (%p975_p7), %v2261_v0  ;;  %v1954_v62 = vld [vmem:[#allocation9 + $0x14] ss:$8 sps:$4 sm:$0xff] (%p975_p7)   ;;  %v1956_v63 = vld [vmem:[#allocation9 + $0x10] ss:$8 sps:$4 sm:$0xff] (%p975_p7)   ;;  %s1760_s15 = sshll.u32 (%p975_p7), %s2337_s13, 8 }
 0x297   : >> { %v1009_v37 = vadd.f32 %v1008_v30, %v1000_v33  ;;  %v1048_v47 = vld [vmem:[%s1047_s24] sm:$0xff]  ;;  %v1044_v51 = vmul.f32 %v1043_v39, %v1039_v40  ;;  %v1957_v3 = vld [vmem:[#allocation11 + $0x14] ss:$8 sps:$4 sm:$0xff] (%p975_p7)   ;;  %v1959_v4 = vld [vmem:[#allocation11 + $0x10] ss:$8 sps:$4 sm:$0xff] (%p975_p7)   ;;  %s1460_s21 = sshll.u32 (%p975_p7), %s2617_s18, 4  ;;  %s2709_s21 = int_to_ptr.vmem [resolvable:$true] %s1460_s21 }
 0x298   : >> { %v1053_v53 = vmul.f32 %v1052_v46, %v1048_v47  ;;  %v1948_v56 = vld [vmem:[#allocation9 + $0x4] ss:$8 sps:$4 sm:$0xff] (%p975_p7)   ;;  %v1950_v57 = vld [vmem:[#allocation9] ss:$8 sps:$4 sm:$0xff] (%p975_p7)   ;;  %v1966_v10 = vld [vmem:[#allocation9 + $0x34] ss:$8 sps:$4 sm:$0xff] (%p975_p7)  }
 0x299   : >> { %v1018_v41 = vadd.f32 %v1017_v34, %v1009_v37  ;;  %1381 = vmatprep.subr.bf16.mxu1 (%p975_p7), %v1948_v56  ;;  %v1951_v60 = vld [vmem:[#allocation11 + $0x4] ss:$8 sps:$4 sm:$0xff] (%p975_p7)   ;;  %v1953_v61 = vld [vmem:[#allocation11] ss:$8 sps:$4 sm:$0xff] (%p975_p7)   ;;  %v1969_v13 = vld [vmem:[#allocation11 + $0x34] ss:$8 sps:$4 sm:$0xff] (%p975_p7)  }
 0x29a   : > { %1382 = vmatpush1.bf16.msra.mxu1 (%p975_p7), %v1950_v57  ;;  %1260 = vmatprep.subr.bf16.mxu0 (%p975_p7), %v1951_v60  ;;  %v1960_v6 = vld [vmem:[#allocation9 + $0x24] ss:$8 sps:$4 sm:$0xff] (%p975_p7)   ;;  %v1962_v8 = vld [vmem:[#allocation9 + $0x20] ss:$8 sps:$4 sm:$0xff] (%p975_p7)   ;;  %v1968_v14 = vld [vmem:[#allocation9 + $0x30] ss:$8 sps:$4 sm:$0xff] (%p975_p7)  }
 0x29b   : >> { %v1027_v49 = vadd.f32 %v1026_v38, %v1018_v41  ;;  %1261 = vmatpush1.bf16.msra.mxu0 (%p975_p7), %v1953_v61  ;;  %1383 = vmatprep.subr.bf16.mxu1 (%p975_p7), %v1954_v62  ;;  %v1963_v0 = vld [vmem:[#allocation11 + $0x24] ss:$8 sps:$4 sm:$0xff] (%p975_p7)   ;;  %v1965_v11 = vld [vmem:[#allocation11 + $0x20] ss:$8 sps:$4 sm:$0xff] (%p975_p7)   ;;  %v1971_v16 = vld [vmem:[#allocation11 + $0x30] ss:$8 sps:$4 sm:$0xff] (%p975_p7)  }
 0x29c   : > { %1262 = vmatprep.subr.bf16.mxu0 (%p975_p7), %v1957_v3  ;;  %v1972_v15 = vld [vmem:[#allocation9 + $0x44] ss:$8 sps:$4 sm:$0xff] (%p975_p7)   ;;  %v1974_v18 = vld [vmem:[#allocation9 + $0x40] ss:$8 sps:$4 sm:$0xff] (%p975_p7)   ;;  %v1978_v19 = vld [vmem:[#allocation9 + $0x54] ss:$8 sps:$4 sm:$0xff] (%p975_p7)  }
 0x29d   : >> { %v1036_v52 = vadd.f32 %v1035_v44, %v1027_v49  ;;  %977 = sbr.rel (!%p975_p7) target bundleno = 652 (0x28c), region = 179  ;;  %v1977_v20 = vld [vmem:[#allocation11 + $0x40] ss:$8 sps:$4 sm:$0xff] (%p975_p7)   ;;  %v1981_v21 = vld [vmem:[#allocation11 + $0x54] ss:$8 sps:$4 sm:$0xff] (%p975_p7)   ;;  %s2788_s22 = sld [smem:[#allocation19_spill]] (%p975_p7) }
 0x29e   : > { %1384 = vmatpush1.bf16.msra.mxu1 (%p975_p7), %v1956_v63  ;;  %v1980_v22 = vld [vmem:[#allocation9 + $0x50] ss:$8 sps:$4 sm:$0xff] (%p975_p7)   ;;  %v1984_v23 = vld [vmem:[#allocation9 + $0x64] ss:$8 sps:$4 sm:$0xff] (%p975_p7)   ;;  %v1986_v36 = vld [vmem:[#allocation9 + $0x60] ss:$8 sps:$4 sm:$0xff] (%p975_p7)  }
 0x29f   : >> { %v1045_v55 = vadd.f32 %v1044_v51, %v1036_v52  ;;  %1385 = vmatprep.subr.bf16.mxu1 (%p975_p7), %v1960_v6  ;;  %1263 = vmatpush1.bf16.msra.mxu0 (%p975_p7), %v1959_v4  ;;  %v1983_v25 = vld [vmem:[#allocation11 + $0x50] ss:$8 sps:$4 sm:$0xff] (%p975_p7)   ;;  %v1987_v29 = vld [vmem:[#allocation11 + $0x64] ss:$8 sps:$4 sm:$0xff] (%p975_p7)   ;;  %v1990_v39 = vld [vmem:[#allocation9 + $0x74] ss:$8 sps:$4 sm:$0xff] (%p975_p7)  }
 0x2a0   : > { %1264 = vmatprep.subr.bf16.mxu0 (%p975_p7), %v1963_v0  ;;  %v1055_v27 = vld [vmem:[#allocation8] sm:$0xff] (%p975_p7)  ;;  %v1989_v47 = vld [vmem:[#allocation11 + $0x60] ss:$8 sps:$4 sm:$0xff] (%p975_p7)   ;;  %s1447_s20 = scalar_lea.sflag (%p975_p7), [#allocation5], %s2542_s30  ;;  %s2146_s16 = scalar_lea.vmem (%p975_p7), %s2709_s21, 256 }
 0x2a1   : >> { %v1054_v7 = vadd.f32 %v1053_v53, %v1045_v55   ;;  %v1058_v28 = vld [vmem:[#allocation2 + $0x10] sm:$0xff] (%p975_p7)  ;;  %v1062_v31 = vrot.slane (%p975_p7), %v1055_v27, %v2582_v42  ;;  %v1071_v33 = vrot.slane (%p975_p7), %v1055_v27, %v2585_v43  ;;  %v1080_v35 = vrot.slane (%p975_p7), %v1055_v27, %v2588_v45  ;;  %p2147_p12 = scmp.ne.s32.totalorder (%p975_p7), %s2709_s21, %s2146_s16  ;;  %s2263_s13 = smov (%p975_p7), [#allocation12]  }
 0x2a2   : > { %1386 = vmatpush1.bf16.msra.mxu1 (%p975_p7), %v1962_v8  ;;  %v1067_v32 = vld [vmem:[#allocation2 + $0x11] sm:$0xff] (%p975_p7)  ;;  %v1089_v38 = vrot.slane (%p975_p7), %v1055_v27, %v2593_v48  ;;  %v1098_v46 = vrot.slane (%p975_p7), %v1055_v27, %v2597_v50  ;;  %v1107_v55 = vrot.slane (%p975_p7), %v1055_v27, %v2601_v54 }
 0x2a3   : >> { %v2247_v17 = vmov %v1054_v7   ;;  %v1129_v58 = vmul.f32 (%p975_p7), 0.044715, %v1054_v7  ;;  %1387 = vmatprep.subr.bf16.mxu1 (%p975_p7), %v1966_v10  ;;  %1265 = vmatpush1.bf16.msra.mxu0 (%p975_p7), %v1965_v11  ;;  %v1128_v26 = vmul.f32 (%p975_p7), 0.5, %v1054_v7  ;;  %v1076_v34 = vld [vmem:[#allocation2 + $0x12] sm:$0xff] (%p975_p7)  ;;  %v1063_v40 = vmul.f32 (%p975_p7), %v1062_v31, %v1058_v28  ;;  %s2707_s29 = scalar_lea.hbm (%p975_p7), %s2788_s22, %s1760_s15  ;;  %p2148_p1 = pnand (%p975_p7), %p2147_p12, %p2487_p10 }
 0x2a4   : > { %1266 = vmatprep.subr.bf16.mxu0 %v1969_v13  ;;  %v1975_v17 = vld [vmem:[#allocation11 + $0x44] ss:$8 sps:$4 sm:$0xff]   ;;  %v1085_v37 = vld [vmem:[#allocation2 + $0x13] sm:$0xff]  ;;  %v1072_v41 = vmul.f32 %v1071_v33, %v1067_v32  ;;  %v1081_v44 = vmul.f32 %v1080_v35, %v1076_v34 }
 0x2a5   : > { %v1130_v2 = vmul.f32 %v1129_v58, %v1054_v7  ;;  %v1094_v49 = vld [vmem:[#allocation2 + $0x14] sm:$0xff]  ;;  %v1090_v45 = vmul.f32 %v1089_v38, %v1085_v37  ;;  %v1116_v58 = vrot.slane %v1055_v27, %v2605_v59  ;;  %p2149_p2 = pneg %p2148_p1 }
 0x2a6   : > { %1388 = vmatpush1.bf16.msra.mxu1 %v1968_v14  ;;  %v1993_v51 = vld [vmem:[#allocation11 + $0x74] ss:$8 sps:$4 sm:$0xff]   ;;  %v1073_v53 = vadd.f32 %v1072_v41, %v1063_v40  ;;  %v1099_v57 = vmul.f32 %v1098_v46, %v1094_v49  ;;  %v1995_v50 = vld [vmem:[#allocation11 + $0x70] ss:$8 sps:$4 sm:$0xff]  }
 0x2a7   : > { %v1131_v5 = vmul.f32 %v1130_v2, %v1054_v7  ;;  %1389 = vmatprep.subr.bf16.mxu1 %v1972_v15  ;;  %1267 = vmatpush1.bf16.msra.mxu0 %v1971_v16  ;;  %v1103_v48 = vld [vmem:[#allocation2 + $0x15] sm:$0xff]  ;;  %v1125_v2 = vrot.slane %v1055_v27, %v2609_v1 }
 0x2a8   : > { %1268 = vmatprep.subr.bf16.mxu0 %v1975_v17  ;;  %v1082_v56 = vadd.f32 %v1081_v44, %v1073_v53  ;;  %v1112_v60 = vld [vmem:[#allocation2 + $0x16] sm:$0xff]  ;;  %v1108_v63 = vmul.f32 %v1107_v55, %v1103_v48 }
 0x2a9   : > { %v1132_v9 = vadd.f32 %v1131_v5, %v1054_v7  ;;  %v1992_v7 = vld [vmem:[#allocation9 + $0x70] ss:$8 sps:$4 sm:$0xff]   ;;  %v1117_v4 = vmul.f32 %v1116_v58, %v1112_v60 }
 0x2aa   : > { %1390 = vmatpush1.bf16.msra.mxu1 %v1974_v18  ;;  %v1091_v62 = vadd.f32 %v1090_v45, %v1082_v56  ;;  %v1121_v3 = vld [vmem:[#allocation2 + $0x17] sm:$0xff] }
 0x2ab   : > { %v1133_v12 = vmul.f32 0.7978846, %v1132_v9  ;;  %1391 = vmatprep.subr.bf16.mxu1 %v1978_v19  ;;  %1269 = vmatpush1.bf16.msra.mxu0 %v1977_v20  ;;  %v1126_v6 = vmul.f32 %v1125_v2, %v1121_v3  ;;  %v1443_v35 = vld [vmem:[%s2548_s9 + $0x8] sm:$0xff]  ;;  %s2150_s9 = sshll.u32 %s2263_s13, 4  ;;  %s2151_s9 = int_to_ptr.vmem [resolvable:$false] %s2150_s9 }
 0x2ac   : > { %1270 = vmatprep.subr.bf16.mxu0 %v1981_v21  ;;  %v1100_v54 = vadd.f32 %v1099_v57, %v1091_v62  ;;  %v1422_v21 = vld [vmem:[%s2760_s6] sm:$0x3]  ;;  %s2152_s23 = scalar_lea.vmem %s2151_s9, 512  ;;  %p2153_p13 = scmp.lt.s32.totalorder %s2709_s21, %s2151_s9 }
 0x2ad   : > { %1996 = vtanh.f32 %v1133_v12  ;;  %v1427_v33 = vrot.slane %v1422_v21, %v2582_v42  ;;  %p2154_p9 = scmp.lt.s32.totalorder %s2152_s23, %s2146_s16 }
 0x2ae   : > { %1392 = vmatpush1.bf16.msra.mxu1 %v1980_v22  ;;  %v1109_v5 = vadd.f32 %v1108_v63, %v1100_v54 }
 0x2af   : > { %1393 = vmatprep.subr.bf16.mxu1 %v1984_v23  ;;  %1271 = vmatpush1.bf16.msra.mxu0 %v1983_v25  ;;  %v1431_v23 = vrot.slane %v1422_v21, %v2585_v43  ;;  %p2155_p0 = por %p2154_p9, %p2153_p13 }
 0x2b0   : > { %1272 = vmatprep.subr.bf16.mxu0 %v1987_v29  ;;  %v1118_v8 = vadd.f32 %v1117_v4, %v1109_v5 }
 0x2b1   : > { %p2156_p11 = pnand %p2155_p0, %p2149_p2 }
 0x2b2   : > { %1394 = vmatpush1.bf16.msra.mxu1 %v1986_v36  ;;  %v1127_v0 = vadd.f32 %v1126_v6, %v1118_v8 }
 0x2b3   : > { %1395 = vmatprep.subr.bf16.mxu1 %v1990_v39  ;;  %1273 = vmatpush1.bf16.msra.mxu0 %v1989_v47 }
 0x2b4   : > { %1274 = vmatprep.subr.bf16.mxu0 %v1993_v51  ;;  %v1139_v59 = vmul.f32 0.044715, %v1127_v0  ;;  %v1138_v13 = vmul.f32 0.5, %v1127_v0 }
 0x2b6   : > { %1396 = vmatpush1.bf16.msra.mxu1 %v1992_v7  ;;  %v1140_v9 = vmul.f32 %v1139_v59, %v1127_v0 }
 0x2b7   : > { %v1997_v24 = vpop.eup %1996  ;;  %1275 = vmatpush1.bf16.msra.mxu0 %v1995_v50 }
 0x2b8   : > { %v1135_v30 = vadd.f32 1.0, %v1997_v24  ;;  %v1141_v10 = vmul.f32 %v1140_v9, %v1127_v0 }
 0x2ba   : > { %v1136_v52 = vmul.f32 %v1135_v30, %v1128_v26  ;;  %v1142_v11 = vadd.f32 %v1141_v10, %v1127_v0 }
 0x2bc   : > { %v1137_v61 = vpack.c.bf16 %v1136_v52, %v1136_v52  ;;  %v1143_v12 = vmul.f32 0.7978846, %v1142_v11 }
 0x2be   : > { %1414 = vmatmul.mubr.bf16.vlgmr.msra.gmra.mrb[4].mxu1 %v1137_v61  ;;  %1998 = vtanh.f32 %v1143_v12 }
 0x2c8   : > { %v1999_v14 = vpop.eup %1998 }
 0x2c9   : > { %v1145_v15 = vadd.f32 1.0, %v1999_v14 }
 0x2cb   : > { %v1146_v1 = vmul.f32 %v1145_v15, %v1138_v13 }
 0x2cd   : > { %v1147_v16 = vpack.c.bf16 %v1146_v1, %v1146_v1 }
 0x2cf   : > { %1293 = vmatmul.mubr.bf16.vlgmr.msra.gmra.mrb[4].mxu0 %v1147_v16 }
 0x391   : > { %v1415_v17 = vpop.f32.mrb[4].mxu1 }
 0x392   : > { %v1417_v18 = vpop.f32.mrb[5].mxu1 }
 0x393   : > { %v1419_v19 = vpop.f32.mrb[6].mxu1 }
 0x394   : > { %v1420_v20 = vpop.f32.mrb[7].mxu1 }
 0x3a2   : > { %v1294_v22 = vpop.f32.mrb[4].mxu0 }
 0x3a3   : > { %v1416_v24 = vadd.f32 %v1415_v17, %v1294_v22  ;;  %v1296_v25 = vpop.f32.mrb[5].mxu0 }
 0x3a4   : > { %v1418_v26 = vadd.f32 %v1417_v18, %v1296_v25  ;;  %v1298_v27 = vpop.f32.mrb[6].mxu0 }
 0x3a5   : > { %v1299_v28 = vpop.f32.mrb[7].mxu0  ;;  %v1434_v34 = vadd.f32 %v1427_v33, %v1416_v24 }
 0x3a6   : > { %v1435_v29 = vadd.f32 %v1431_v23, %v1418_v26 }
 0x3a8   : > { %v1753_v30 = vmul.f32 -1.442695, %v1435_v29 }
 0x3aa   : > { %2000 = vpow2.f32 %v1753_v30 }
 0x3b4   : > { %v2001_v31 = vpop.eup %2000 }
 0x3b5   : > { %v1439_v32 = vadd.f32 1.0, %v2001_v31 }
 0x3b7   : > { %2002 = vrcp.f32 %v1439_v32 }
 0x3c1   : > { %v2003_v43 = vpop.eup %2002 }
 0x3c2   : > { %v1442_v36 = vmul.f32 %v2003_v43, %v1434_v34 }
 0x3c4   : > { %v1444_v37 = vadd.f32 %v1443_v35, %v1442_v36 }
 0x3c6   : > { %1445 = vst [vmem:[%s2617_s18 + $0x8] sm:$0xff] %v1444_v37 }
 0x3c7   : > { %2159 = shalt.err (!%p2156_p11)
}
 0x3c8   : > { %s2160_s18 = scalar_lea.hbm %s2707_s29, 256  ;;  %s2164_s26 = scalar_lea.hbm %s2788_s22, 512 }
 0x3c9   : > { %p2161_p4 = scmp.ne.s32.totalorder %s2707_s29, %s2160_s18  ;;  %p2165_p3 = scmp.lt.u32.totalorder %s2707_s29, %s2788_s22 }
 0x3ca   : > { %p2166_p5 = scmp.lt.u32.totalorder %s2164_s26, %s2160_s18  ;;  %p2168_p12 = scmp.lt.u32.totalorder %s2160_s18, %s2707_s29 }
 0x3cb   : > { %p2162_p8 = pnand %p2161_p4, %p2487_p10 }
 0x3cc   : > { %p2167_p7 = por %p2166_p5, %p2165_p3 }
 0x3cd   : > { %p2163_p6 = pneg %p2162_p8 }
 0x3ce   : > { %p2169_p1 = por %p2168_p12, %p2167_p7 }
 0x3d0   : > { %p2170_p2 = pnand %p2169_p1, %p2163_p6 }
 0x3d2   : > { %2173 = shalt.err (!%p2170_p2)
}
 0x3d3   : > { %s2264_s19 = smov 128   ;;  %s2265_s16 = smov 8  }
 0x3d4   : > { %1779 = dma.vmem_to_hbm [thread:$0]  (%p2487_p10), %s2709_s21, 256, %s2707_s29, %s1447_s20, %s2264_s19, %s2264_s19, %s2265_s16  }
 0x3d5 PF: > { %s2789_s13 = sld [smem:[#allocation17_spill]]  ;;  %s2790_s9 = sld [smem:[#allocation18_spill]] }
 0x3d6   : > { %p2792_p9 = scmp.ge.s32.totalorder %s2236_s12, 2 }
 0x3db   : > { %s1475_s23 = sand.u32 1, %s2789_s13   ;;  %p2791_p13 = scmp.ne.s32.totalorder %s2790_s9, 0 }
 0x3dc   : > { %s1476_s18 = scalar_lea.sflag [#allocation5], %s1475_s23 }
 0x3dd   : > { %p1799_p0 = pnand %p2792_p9, %p2791_p13 }
 0x3df   : > { %2219 = dma.done.wait (!%p1799_p0), %s1476_s18, 256  }
 0x3e0   : > { %2221 = vsyncadd (!%p1799_p0), %s1476_s18, 4294967040  ;;  %p24_p11 = scmp.ge.s32.totalorder %s2477_s14, 4   ;;  %s2793_s30 = smov %s2228_s10 }
 0x3e1   : > { %s2794_s10 = smov %s2232_s11  ;;  %s2795_s11 = smov %s2493_s28 }
 0x3e2   : > { %s2796_s12 = smov %s2477_s14  ;;  %26 = sbr.rel (!%p24_p11) target bundleno = 9 (0x9), region = 190 }
 0x3e9   :  { %1481 = vsyncpa [#allocation4], 1 }
 0x3ea   :  { %1483 = vsyncpa [#allocation4 + $0x1], 1 }
 0x3eb   :  { %1484 = vsyncpa [#allocation7], 1 }
 0x3ec   :  { %1485 = vsyncpa [#allocation10], 1 }
 0x3ed   :  { %1486 = vsyncpa [#allocation5], 1 }
 0x3ee   :  { %1488 = vsyncpa [#allocation5 + $0x1], 1 }

</bundles_post_ra>
